<compile_context>
chip_gen: v7x
topology: tpu7x:2x2x1
jax: 0.10.0
libtpu: 0.0.40
codegen_flags: <defaults>
</compile_context>

<pallas_src>
import numpy as np
import jax
import jax.numpy as jnp
from jax import lax
from jax.experimental import pallas as pl
from jax.experimental.pallas import tpu as pltpu

BN_EPS = 1e-5


def _round_up(x, m):
    return ((x + m - 1) // m) * m


# ----------------------------- Pallas kernel --------------------------------

def _conv_gemm_kernel(x_ref, w_ref, s_ref, t_ref, o_ref):
    """One output tile = one deep-K matmul + fused BN affine + ReLU.

    x_ref : (tm, Kp)  bf16  im2col activation tile (all kh*kw taps folded in K)
    w_ref : (Kp, tn)  bf16  weight tile (resident across the inner M axis)
    s_ref : (1, tn)   f32   folded BN scale (per output channel)
    t_ref : (1, tn)   f32   folded BN shift (per output channel)
    o_ref : (tm, tn)  output dtype
    """
    acc = jnp.dot(x_ref[...], w_ref[...], preferred_element_type=jnp.float32)
    y = acc * s_ref[...] + t_ref[...]           # f32 epilogue (v5e-safe VPU ops)
    o_ref[...] = jnp.maximum(y, 0.0).astype(o_ref.dtype)


# ------------------------------ tiling helpers -------------------------------

def _pick_m_tile(M, cap=512):
    """Row tile: >=2 tiles along M whenever possible (v7x megacore), 16-aligned."""
    tm = min(cap, max(16, _round_up(-(-M // 2), 16)))
    Mp = _round_up(M, tm)
    return Mp, tm


def _pick_n_tile(N, cap=256):
    """Column tile: lane-dense (multiple of 128); single full-extent block if small."""
    Np = _round_up(N, 128)
    if Np <= cap:
        return Np, Np
    Np = _round_up(Np, cap)
    return Np, cap


def _pad_k(K):
    """Reduction-depth padding: multiple of 128 for deep K, 8-aligned for tiny K."""
    return _round_up(K, 128) if K >= 128 else _round_up(K, 8)


# --------------------------- fused ConvBlock ---------------------------------

def conv_bn_relu_nhwc(x, wt, scale, shift, *, cout, kh=3, kw=3, stride=2,
                      padding=1, out_dtype=jnp.bfloat16, m_cap=512, n_cap=256):
    """Conv2d(kh x kw, stride, pad) + BatchNorm(eval) + ReLU on NHWC input.

    wt    : (Kp, Np) bf16   prepared weight, K layout = (kh, kw, Cin), padded.
    scale : (1, Np)  f32    folded BN scale, padded with zeros.
    shift : (1, Np)  f32    folded BN shift, padded with zeros.
    """
    B, H, W, C = x.shape
    Kp, Np = wt.shape
    K = kh * kw * C
    Ho = (H + 2 * padding - kh) // stride + 1
    Wo = (W + 2 * padding - kw) // stride + 1
    M = B * Ho * Wo

    xp = jnp.pad(x, ((0, 0), (padding, padding), (padding, padding), (0, 0)))

    # One (M, kh*kw*C) im2col slab: taps folded into the matmul K dimension.
    taps = [xp[:, di:di + stride * (Ho - 1) + 1:stride,
                  dj:dj + stride * (Wo - 1) + 1:stride, :]
            for di in range(kh) for dj in range(kw)]
    xt = jnp.concatenate(taps, axis=-1).reshape(M, K).astype(jnp.bfloat16)

    Mp, tm = _pick_m_tile(M, m_cap)
    Np_chk, tn = _pick_n_tile(cout, n_cap)
    assert Np_chk == Np and Kp == _pad_k(K)
    if Mp != M or Kp != K:
        xt = jnp.pad(xt, ((0, Mp - M), (0, Kp - K)))

    # N outermost, M innermost: the weight block index is constant along the
    # inner axis, so the (Kp, tn) weight tile stays VMEM-resident.
    grid = (Np // tn, Mp // tm)
    out = pl.pallas_call(
        _conv_gemm_kernel,
        out_shape=jax.ShapeDtypeStruct((Mp, Np), out_dtype),
        grid_spec=pltpu.PrefetchScalarGridSpec(
            num_scalar_prefetch=0,
            grid=grid,
            in_specs=[
                pl.BlockSpec((tm, Kp), lambda j, i: (i, 0)),
                pl.BlockSpec((Kp, tn), lambda j, i: (0, j)),
                pl.BlockSpec((1, tn), lambda j, i: (0, j)),
                pl.BlockSpec((1, tn), lambda j, i: (0, j)),
            ],
            out_specs=pl.BlockSpec((tm, tn), lambda j, i: (i, j)),
        ),
        compiler_params=pltpu.CompilerParams(
            dimension_semantics=("parallel", "parallel")),
    )(xt, wt, scale, shift)

    if Mp != M or Np != cout:
        out = out[:M, :cout]          # padded rows/cols hold garbage/zeros
    return out.reshape(B, Ho, Wo, cout)


# ------------------------------ parameters -----------------------------------

def init_params(key):
    keys = jax.random.split(key, 6)

    def conv_init(k1, k2, out_c, in_c, ksz):
        bound = 1.0 / np.sqrt(in_c * ksz * ksz)
        w = jax.random.uniform(k1, (out_c, in_c, ksz, ksz), jnp.float32,
                               -bound, bound)
        b = jax.random.uniform(k2, (out_c,), jnp.float32, -bound, bound)
        return w, b

    def bn_init(c):
        return dict(gamma=jnp.ones((c,), jnp.float32),
                    beta=jnp.zeros((c,), jnp.float32),
                    mean=jnp.zeros((c,), jnp.float32),
                    var=jnp.ones((c,), jnp.float32))

    blocks = []
    for idx, (cin, cout) in enumerate([(3, 64), (64, 128), (128, 256)]):
        w, b = conv_init(keys[2 * idx], keys[2 * idx + 1], cout, cin, 3)
        blocks.append(dict(w=w, b=b, bn=bn_init(cout)))
    return dict(blocks=blocks)


def prepare_params(params, *, n_cap=256):
    """Hoisted (run once): bf16 weight repack + eval-mode BN fold + padding."""
    arrays, cfgs = [], []
    for blk in params["blocks"]:
        w, b, bn = blk["w"], blk["b"], blk["bn"]
        O, Ci, kh, kw = w.shape
        K = kh * kw * Ci
        Kp = _pad_k(K)
        Np, _ = _pick_n_tile(O, n_cap)

        # (O, Ci, kh, kw) -> (kh, kw, Ci, O) -> (K, O): matches the im2col
        # K layout (tap-major, channel-minor).
        wt = jnp.transpose(w, (2, 3, 1, 0)).reshape(K, O).astype(jnp.bfloat16)

        s = bn["gamma"] / jnp.sqrt(bn["var"] + BN_EPS)
        scale = s.reshape(1, O).astype(jnp.float32)
        shift = ((b - bn["mean"]) * s + bn["beta"]).reshape(1, O).astype(jnp.float32)

        if Kp != K:
            wt = jnp.pad(wt, ((0, Kp - K), (0, 0)))
        if Np != O:
            wt = jnp.pad(wt, ((0, 0), (0, Np - O)))
            scale = jnp.pad(scale, ((0, 0), (0, Np - O)))
            shift = jnp.pad(shift, ((0, 0), (0, Np - O)))

        arrays.append(dict(wt=wt, scale=scale, shift=shift))
        cfgs.append((int(kh), int(kw), int(Ci), int(O)))
    return arrays, tuple(cfgs)


# ------------------------------- forward -------------------------------------

def spatial_path_forward(block_arrays, x_nchw, cfgs):
    x = jnp.transpose(x_nchw, (0, 2, 3, 1))             # NCHW -> NHWC (once)
    n = len(block_arrays)
    for i, (arrs, (kh, kw, cin, cout)) in enumerate(zip(block_arrays, cfgs)):
        out_dtype = jnp.float32 if i == n - 1 else jnp.bfloat16
        x = conv_bn_relu_nhwc(x, arrs["wt"], arrs["scale"], arrs["shift"],
                              cout=cout, kh=kh, kw=kw, stride=2, padding=1,
                              out_dtype=out_dtype)
    return jnp.transpose(x, (0, 3, 1, 2))                # NHWC -> NCHW (once)


def _reference_forward(params, x):
    """Pure-XLA f32 reference for correctness checking only."""
    h = x
    for blk in params["blocks"]:
        y = lax.conv_general_dilated(
            h, blk["w"], window_strides=(2, 2), padding=((1, 1), (1, 1)),
            dimension_numbers=("NCHW", "OIHW", "NCHW"))
        y = y + blk["b"].reshape(1, -1, 1, 1)
        bn = blk["bn"]
        s = (bn["gamma"] / jnp.sqrt(bn["var"] + BN_EPS)).reshape(1, -1, 1, 1)
        y = (y - bn["mean"].reshape(1, -1, 1, 1)) * s + bn["beta"].reshape(1, -1, 1, 1)
        h = jnp.maximum(y, 0.0)
    return h


# --------------------------------- main ---------------------------------------

if __name__ == "__main__":
    key = jax.random.PRNGKey(0)
    pkey, xkey = jax.random.split(key)
    params = init_params(pkey)
    x = jax.random.normal(xkey, (2, 3, 32, 32), jnp.float32)

    block_arrays, cfgs = prepare_params(params)          # hoisted once
    fwd = jax.jit(spatial_path_forward, static_argnums=(2,))
    y = jax.block_until_ready(fwd(block_arrays, x, cfgs))

    assert y.shape == (2, 256, 4, 4), y.shape
    assert bool(jnp.all(jnp.isfinite(y)))

    ref = jax.block_until_ready(jax.jit(_reference_forward)(params, x))
    # bf16 MXU operands + bf16 intermediate activations -> loose tolerance.
    assert bool(jnp.all(jnp.abs(y - ref) <= 0.05 + 0.05 * jnp.abs(ref)))

    print("KERNEL_OK")
</pallas_src>

<mosaic_0001>
module attributes {stable_mosaic.version = 11 : i64} {
  func.func @_conv_gemm_kernel(%arg0: i32, %arg1: i32, %arg2: memref<256x32xbf16, #tpu.memory_space<vmem>>, %arg3: memref<32x128xbf16, #tpu.memory_space<vmem>>, %arg4: memref<1x128xf32, #tpu.memory_space<vmem>>, %arg5: memref<1x128xf32, #tpu.memory_space<vmem>>, %arg6: memref<256x128xbf16, #tpu.memory_space<vmem>>) attributes {dimension_semantics = [#tpu.dimension_semantics<parallel>, #tpu.dimension_semantics<parallel>], iteration_bounds = array<i64: 1, 2>, scalar_prefetch = 0 : i64, scratch_operands = 0 : i64, tpu.core_type = #tpu.core_type<tc>, window_params = [{transform_indices = @transform_0, window_bounds = array<i64: 256, 32>}, {transform_indices = @transform_1, window_bounds = array<i64: 32, 128>}, {transform_indices = @transform_2, window_bounds = array<i64: 1, 128>}, {transform_indices = @transform_3, window_bounds = array<i64: 1, 128>}, {transform_indices = @transform_4, window_bounds = array<i64: 256, 128>}]} {
    %c0 = arith.constant 0 : index
    %c0_0 = arith.constant 0 : index
    %0 = vector.load %arg2[%c0, %c0_0] : memref<256x32xbf16, #tpu.memory_space<vmem>>, vector<256x32xbf16>
    %c0_1 = arith.constant 0 : index
    %c0_2 = arith.constant 0 : index
    %1 = vector.load %arg3[%c0_1, %c0_2] : memref<32x128xbf16, #tpu.memory_space<vmem>>, vector<32x128xbf16>
    %cst = arith.constant dense<0.000000e+00> : vector<256x128xf32>
    %2 = tpu.matmul %0, %1, %cst {dimension_numbers = #tpu.dot_dimension_numbers<[1], [0], [0], [1], [0, 0, 1, 1], [], []>} : vector<256x32xbf16>, vector<32x128xbf16>, vector<256x128xf32> -> vector<256x128xf32>
    %c0_3 = arith.constant 0 : index
    %c0_4 = arith.constant 0 : index
    %3 = vector.load %arg4[%c0_3, %c0_4] : memref<1x128xf32, #tpu.memory_space<vmem>>, vector<1x128xf32>
    %4 = vector.broadcast %3 : vector<1x128xf32> to vector<256x128xf32>
    %5 = arith.mulf %2, %4 : vector<256x128xf32>
    %c0_5 = arith.constant 0 : index
    %c0_6 = arith.constant 0 : index
    %6 = vector.load %arg5[%c0_5, %c0_6] : memref<1x128xf32, #tpu.memory_space<vmem>>, vector<1x128xf32>
    %7 = vector.broadcast %6 : vector<1x128xf32> to vector<256x128xf32>
    %8 = arith.addf %5, %7 : vector<256x128xf32>
    %cst_7 = arith.constant 0.000000e+00 : f32
    %9 = vector.broadcast %cst_7 : f32 to vector<256x128xf32>
    %10 = arith.maximumf %8, %9 : vector<256x128xf32>
    %11 = arith.truncf %10 : vector<256x128xf32> to vector<256x128xbf16>
    %c0_8 = arith.constant 0 : index
    %c0_9 = arith.constant 0 : index
    %12 = vector.load %arg6[%c0_8, %c0_9] : memref<256x128xbf16, #tpu.memory_space<vmem>>, vector<256x128xbf16>
    tpu.vector_store %arg6[%c0_8, %c0_9], %11 {strides = array<i32>} : memref<256x128xbf16, #tpu.memory_space<vmem>>, vector<256x128xbf16>,
    return
  }
  func.func @transform_0(%arg0: i32, %arg1: i32) -> (i32, i32) {
    %c0_i32 = arith.constant 0 : i32
    %c0_i32_0 = arith.constant 0 : i32
    return %arg1, %c0_i32 : i32, i32
  }
  func.func @transform_1(%arg0: i32, %arg1: i32) -> (i32, i32) {
    %c0_i32 = arith.constant 0 : i32
    %c0_i32_0 = arith.constant 0 : i32
    return %c0_i32, %arg0 : i32, i32
  }
  func.func @transform_2(%arg0: i32, %arg1: i32) -> (i32, i32) {
    %c0_i32 = arith.constant 0 : i32
    %c0_i32_0 = arith.constant 0 : i32
    return %c0_i32, %arg0 : i32, i32
  }
  func.func @transform_3(%arg0: i32, %arg1: i32) -> (i32, i32) {
    %c0_i32 = arith.constant 0 : i32
    %c0_i32_0 = arith.constant 0 : i32
    return %c0_i32, %arg0 : i32, i32
  }
  func.func @transform_4(%arg0: i32, %arg1: i32) -> (i32, i32) {
    %c0_i32 = arith.constant 0 : i32
    return %arg1, %arg0 : i32, i32
  }
}

module attributes {stable_mosaic.version = 11 : i64} {
  func.func @_conv_gemm_kernel(%arg0: i32, %arg1: i32, %arg2: memref<64x640xbf16, #tpu.memory_space<vmem>>, %arg3: memref<640x128xbf16, #tpu.memory_space<vmem>>, %arg4: memref<1x128xf32, #tpu.memory_space<vmem>>, %arg5: memref<1x128xf32, #tpu.memory_space<vmem>>, %arg6: memref<64x128xbf16, #tpu.memory_space<vmem>>) attributes {dimension_semantics = [#tpu.dimension_semantics<parallel>, #tpu.dimension_semantics<parallel>], iteration_bounds = array<i64: 1, 2>, scalar_prefetch = 0 : i64, scratch_operands = 0 : i64, tpu.core_type = #tpu.core_type<tc>, window_params = [{transform_indices = @transform_0, window_bounds = array<i64: 64, 640>}, {transform_indices = @transform_1, window_bounds = array<i64: 640, 128>}, {transform_indices = @transform_2, window_bounds = array<i64: 1, 128>}, {transform_indices = @transform_3, window_bounds = array<i64: 1, 128>}, {transform_indices = @transform_4, window_bounds = array<i64: 64, 128>}]} {
    %c0 = arith.constant 0 : index
    %c0_0 = arith.constant 0 : index
    %0 = vector.load %arg2[%c0, %c0_0] : memref<64x640xbf16, #tpu.memory_space<vmem>>, vector<64x640xbf16>
    %c0_1 = arith.constant 0 : index
    %c0_2 = arith.constant 0 : index
    %1 = vector.load %arg3[%c0_1, %c0_2] : memref<640x128xbf16, #tpu.memory_space<vmem>>, vector<640x128xbf16>
    %cst = arith.constant dense<0.000000e+00> : vector<64x128xf32>
    %2 = tpu.matmul %0, %1, %cst {dimension_numbers = #tpu.dot_dimension_numbers<[1], [0], [0], [1], [0, 0, 1, 1], [], []>} : vector<64x640xbf16>, vector<640x128xbf16>, vector<64x128xf32> -> vector<64x128xf32>
    %c0_3 = arith.constant 0 : index
    %c0_4 = arith.constant 0 : index
    %3 = vector.load %arg4[%c0_3, %c0_4] : memref<1x128xf32, #tpu.memory_space<vmem>>, vector<1x128xf32>
    %4 = vector.broadcast %3 : vector<1x128xf32> to vector<64x128xf32>
    %5 = arith.mulf %2, %4 : vector<64x128xf32>
    %c0_5 = arith.constant 0 : index
    %c0_6 = arith.constant 0 : index
    %6 = vector.load %arg5[%c0_5, %c0_6] : memref<1x128xf32, #tpu.memory_space<vmem>>, vector<1x128xf32>
    %7 = vector.broadcast %6 : vector<1x128xf32> to vector<64x128xf32>
    %8 = arith.addf %5, %7 : vector<64x128xf32>
    %cst_7 = arith.constant 0.000000e+00 : f32
    %9 = vector.broadcast %cst_7 : f32 to vector<64x128xf32>
    %10 = arith.maximumf %8, %9 : vector<64x128xf32>
    %11 = arith.truncf %10 : vector<64x128xf32> to vector<64x128xbf16>
    %c0_8 = arith.constant 0 : index
    %c0_9 = arith.constant 0 : index
    %12 = vector.load %arg6[%c0_8, %c0_9] : memref<64x128xbf16, #tpu.memory_space<vmem>>, vector<64x128xbf16>
    tpu.vector_store %arg6[%c0_8, %c0_9], %11 {strides = array<i32>} : memref<64x128xbf16, #tpu.memory_space<vmem>>, vector<64x128xbf16>,
    return
  }
  func.func @transform_0(%arg0: i32, %arg1: i32) -> (i32, i32) {
    %c0_i32 = arith.constant 0 : i32
    %c0_i32_0 = arith.constant 0 : i32
    return %arg1, %c0_i32 : i32, i32
  }
  func.func @transform_1(%arg0: i32, %arg1: i32) -> (i32, i32) {
    %c0_i32 = arith.constant 0 : i32
    %c0_i32_0 = arith.constant 0 : i32
    return %c0_i32, %arg0 : i32, i32
  }
  func.func @transform_2(%arg0: i32, %arg1: i32) -> (i32, i32) {
    %c0_i32 = arith.constant 0 : i32
    %c0_i32_0 = arith.constant 0 : i32
    return %c0_i32, %arg0 : i32, i32
  }
  func.func @transform_3(%arg0: i32, %arg1: i32) -> (i32, i32) {
    %c0_i32 = arith.constant 0 : i32
    %c0_i32_0 = arith.constant 0 : i32
    return %c0_i32, %arg0 : i32, i32
  }
  func.func @transform_4(%arg0: i32, %arg1: i32) -> (i32, i32) {
    %c0_i32 = arith.constant 0 : i32
    return %arg1, %arg0 : i32, i32
  }
}

module attributes {stable_mosaic.version = 11 : i64} {
  func.func @_conv_gemm_kernel(%arg0: i32, %arg1: i32, %arg2: memref<16x1152xbf16, #tpu.memory_space<vmem>>, %arg3: memref<1152x256xbf16, #tpu.memory_space<vmem>>, %arg4: memref<1x256xf32, #tpu.memory_space<vmem>>, %arg5: memref<1x256xf32, #tpu.memory_space<vmem>>, %arg6: memref<16x256xf32, #tpu.memory_space<vmem>>) attributes {dimension_semantics = [#tpu.dimension_semantics<parallel>, #tpu.dimension_semantics<parallel>], iteration_bounds = array<i64: 1, 2>, scalar_prefetch = 0 : i64, scratch_operands = 0 : i64, tpu.core_type = #tpu.core_type<tc>, window_params = [{transform_indices = @transform_0, window_bounds = array<i64: 16, 1152>}, {transform_indices = @transform_1, window_bounds = array<i64: 1152, 256>}, {transform_indices = @transform_2, window_bounds = array<i64: 1, 256>}, {transform_indices = @transform_3, window_bounds = array<i64: 1, 256>}, {transform_indices = @transform_4, window_bounds = array<i64: 16, 256>}]} {
    %c0 = arith.constant 0 : index
    %c0_0 = arith.constant 0 : index
    %0 = vector.load %arg2[%c0, %c0_0] : memref<16x1152xbf16, #tpu.memory_space<vmem>>, vector<16x1152xbf16>
    %c0_1 = arith.constant 0 : index
    %c0_2 = arith.constant 0 : index
    %1 = vector.load %arg3[%c0_1, %c0_2] : memref<1152x256xbf16, #tpu.memory_space<vmem>>, vector<1152x256xbf16>
    %cst = arith.constant dense<0.000000e+00> : vector<16x256xf32>
    %2 = tpu.matmul %0, %1, %cst {dimension_numbers = #tpu.dot_dimension_numbers<[1], [0], [0], [1], [0, 0, 1, 1], [], []>} : vector<16x1152xbf16>, vector<1152x256xbf16>, vector<16x256xf32> -> vector<16x256xf32>
    %c0_3 = arith.constant 0 : index
    %c0_4 = arith.constant 0 : index
    %3 = vector.load %arg4[%c0_3, %c0_4] : memref<1x256xf32, #tpu.memory_space<vmem>>, vector<1x256xf32>
    %4 = vector.broadcast %3 : vector<1x256xf32> to vector<16x256xf32>
    %5 = arith.mulf %2, %4 : vector<16x256xf32>
    %c0_5 = arith.constant 0 : index
    %c0_6 = arith.constant 0 : index
    %6 = vector.load %arg5[%c0_5, %c0_6] : memref<1x256xf32, #tpu.memory_space<vmem>>, vector<1x256xf32>
    %7 = vector.broadcast %6 : vector<1x256xf32> to vector<16x256xf32>
    %8 = arith.addf %5, %7 : vector<16x256xf32>
    %cst_7 = arith.constant 0.000000e+00 : f32
    %9 = vector.broadcast %cst_7 : f32 to vector<16x256xf32>
    %10 = arith.maximumf %8, %9 : vector<16x256xf32>
    %c0_8 = arith.constant 0 : index
    %c0_9 = arith.constant 0 : index
    %11 = vector.load %arg6[%c0_8, %c0_9] : memref<16x256xf32, #tpu.memory_space<vmem>>, vector<16x256xf32>
    tpu.vector_store %arg6[%c0_8, %c0_9], %10 {strides = array<i32>} : memref<16x256xf32, #tpu.memory_space<vmem>>, vector<16x256xf32>,
    return
  }
  func.func @transform_0(%arg0: i32, %arg1: i32) -> (i32, i32) {
    %c0_i32 = arith.constant 0 : i32
    %c0_i32_0 = arith.constant 0 : i32
    return %arg1, %c0_i32 : i32, i32
  }
  func.func @transform_1(%arg0: i32, %arg1: i32) -> (i32, i32) {
    %c0_i32 = arith.constant 0 : i32
    %c0_i32_0 = arith.constant 0 : i32
    return %c0_i32, %arg0 : i32, i32
  }
  func.func @transform_2(%arg0: i32, %arg1: i32) -> (i32, i32) {
    %c0_i32 = arith.constant 0 : i32
    %c0_i32_0 = arith.constant 0 : i32
    return %c0_i32, %arg0 : i32, i32
  }
  func.func @transform_3(%arg0: i32, %arg1: i32) -> (i32, i32) {
    %c0_i32 = arith.constant 0 : i32
    %c0_i32_0 = arith.constant 0 : i32
    return %c0_i32, %arg0 : i32, i32
  }
  func.func @transform_4(%arg0: i32, %arg1: i32) -> (i32, i32) {
    %c0_i32 = arith.constant 0 : i32
    return %arg1, %arg0 : i32, i32
  }
}

</mosaic_0001>

<bundles_post_ra>
// kernel: spatial_path_forward.3
= control target key start
LH: loop header
LB: loop body
LE: loop exit
PB: predicated region body
PF: predicated region fallthrough
CT: control target
= control target key end

     0   :  { %s1347_s15 = smov 0   ;;  %s1349_s16 = smov 0   ;;  %s1519_s0 = inlined_call_operand.vmem [shape: bf16[512,32], index: 0, kind: input, shape index: {}]   ;;  %s1520_s1 = inlined_call_operand.vmem [shape: bf16[32,128], index: 1, kind: input, shape index: {}]   ;;  %s1521_s2 = inlined_call_operand.vmem [shape: f32[1,128], index: 2, kind: input, shape index: {}]   ;;  %s1522_s3 = inlined_call_operand.vmem [shape: f32[1,128], index: 3, kind: input, shape index: {}]   ;;  %s1523_s4 = inlined_call_operand.vmem [shape: bf16[512,128], index: 4, kind: output, shape index: {}]  }
   0x1   :  { %s1351_s17 = smov 0  }
   0x2 LB: > { %s23_s18 = sadd.s32 1, %s1316_s16  ;;  %p996_p0 = scmp.ge.s32.totalorder %s1320_s17, 1  ;;  %s1320_s17 = sphi %s1351_s17, %s14_s17   ;;  %s1316_s16 = sphi %s1349_s16, %s1525_s16   ;;  %s1312_s15 = sphi %s1347_s15, %s1524_s15  }
   0x3   : > { %p24_p1 = scmp.ge.s32.totalorder %s23_s18, 2  ;;  %p202_p2 = scmp.lt.s32.totalorder %s1320_s17, 3 }
   0x5   : > { %s1527_s18 = smov (%p24_p1, %s23_s18), 0  ;;  %p203_p3 = pnand %p996_p0, %p202_p2 }
   0x6   : > { %v1280_v0 = vld [vmem:[%s1520_s1] sm:$0xff] (!%p203_p3)   ;;  %s997_s21 = sshll.u32 (!%p203_p3), %s1312_s15, 5  ;;  %v1281_v1 = vld [vmem:[%s1520_s1 + $0x8] sm:$0xff] (!%p203_p3)   ;;  %vm395_vm0 = vcmask (!%p203_p3), 261120  }
   0x7   : > { %206 = sbr.rel (%p203_p3) target bundleno = 269 (0x10d), region = 36  ;;  %p242_p4 = scmp.lt.s32.totalorder (!%p203_p3), %s997_s21, 63  ;;  %1216 = vmatprep.subr.bf16.mxu0 (!%p203_p3), %v1280_v0  ;;  %1252 = vmatprep.subr.bf16.mxu1 (!%p203_p3), %v1280_v0  ;;  %v1416_v18 = vld [vmem:[%s1521_s2] ss:$0 sm:$0xff] (!%p203_p3) }
   0x8   : > { %1217 = vmatpush3.bf16.msra.mxu0 (!%p203_p3), %v1280_v0  ;;  %1254 = vmatpush3.bf16.msra.mxu1 (!%p203_p3), %v1280_v0  ;;  %v1421_v20 = vld [vmem:[%s1522_s3] ss:$0 sm:$0xff] (!%p203_p3) }
   0x9   : > { %1218 = vmatprep.subr.bf16.mxu0 (!%p203_p3), %v1281_v1  ;;  %1253 = vmatprep.subr.bf16.mxu1 (!%p203_p3), %v1281_v1 }
   0xc   : > { %1219 = vmatpush3.bf16.msra.mxu0 (!%p203_p3), %v1281_v1  ;;  %1255 = vmatpush3.bf16.msra.mxu1 (!%p203_p3), %v1281_v1 }
   0xe   : > { %s1529_s21 = smov (!%p242_p4, %s997_s21), 63 }
   0xf   : > { %s998_s24 = sshll.u32 %s1529_s21, 2 }
  0x10   : > { %s1379_s27 = scalar_lea.vmem %s1519_s0, %s998_s24  ;;  %s1444_s8 = scalar_lea.vmem %s1523_s4, %s998_s24 }
  0x11   : > { %v1282_v2 = vld [vmem:[%s1379_s27] sm:$0xff]   ;;  %v1284_v4 = vld [vmem:[%s1379_s27 + $0x8] sm:$0xff]   ;;  %v1286_v6 = vld [vmem:[%s1379_s27 + $0x10] sm:$0xff]  }
  0x12   : > { %v1283_v3 = vld [vmem:[%s1379_s27 + $0x40] sm:$0xff]   ;;  %1220 = vmatprep.mubr.msk.bf16.mxu0 %vm395_vm0, %v1282_v2  ;;  %v1285_v5 = vld [vmem:[%s1379_s27 + $0x48] sm:$0xff]   ;;  %v1287_v7 = vld [vmem:[%s1379_s27 + $0x50] sm:$0xff]  }
  0x13   : > { %1236 = vmatprep.mubr.msk.bf16.mxu1 %vm395_vm0, %v1283_v3  ;;  %1221 = vmatmul.mubr.msk.bf16.vlgmr.msra.gmra.mrb[0].mxu0 %vm395_vm0, %v1284_v4  ;;  %v1288_v8 = vld [vmem:[%s1379_s27 + $0x18] sm:$0xff]   ;;  %v1290_v10 = vld [vmem:[%s1379_s27 + $0x20] sm:$0xff]   ;;  %v1292_v12 = vld [vmem:[%s1379_s27 + $0x28] sm:$0xff]  }
  0x14   : > { %1237 = vmatmul.mubr.msk.bf16.vlgmr.msra.gmra.mrb[0].mxu1 %vm395_vm0, %v1285_v5  ;;  %1224 = vmatprep.mubr.msk.bf16.mxu0 %vm395_vm0, %v1286_v6  ;;  %v1289_v9 = vld [vmem:[%s1379_s27 + $0x58] sm:$0xff]   ;;  %v1291_v11 = vld [vmem:[%s1379_s27 + $0x60] sm:$0xff]   ;;  %v1293_v13 = vld [vmem:[%s1379_s27 + $0x68] sm:$0xff]  }
  0x15   : > { %1240 = vmatprep.mubr.msk.bf16.mxu1 %vm395_vm0, %v1287_v7  ;;  %v1294_v14 = vld [vmem:[%s1379_s27 + $0x30] sm:$0xff]   ;;  %v1296_v16 = vld [vmem:[%s1379_s27 + $0x38] sm:$0xff]  }
  0x16   : > { %v1295_v15 = vld [vmem:[%s1379_s27 + $0x70] sm:$0xff]   ;;  %v1297_v17 = vld [vmem:[%s1379_s27 + $0x78] sm:$0xff]  }
  0x1b   : > { %1225 = vmatmul.mubr.msk.bf16.gmra.mrb[4].mxu0 %vm395_vm0, %v1288_v8 }
  0x1c   : > { %1241 = vmatmul.mubr.msk.bf16.gmra.mrb[4].mxu1 %vm395_vm0, %v1289_v9  ;;  %1228 = vmatprep.mubr.msk.bf16.mxu0 %vm395_vm0, %v1290_v10 }
  0x1d   : > { %1244 = vmatprep.mubr.msk.bf16.mxu1 %vm395_vm0, %v1291_v11 }
  0x23   : > { %1229 = vmatmul.mubr.msk.bf16.gmra.mrb[8].mxu0 %vm395_vm0, %v1292_v12 }
  0x24   : > { %1245 = vmatmul.mubr.msk.bf16.gmra.mrb[8].mxu1 %vm395_vm0, %v1293_v13  ;;  %1232 = vmatprep.mubr.msk.bf16.mxu0 %vm395_vm0, %v1294_v14 }
  0x25   : > { %1248 = vmatprep.mubr.msk.bf16.mxu1 %vm395_vm0, %v1295_v15 }
  0x2b   : > { %1233 = vmatmul.mubr.msk.bf16.gmra.mrb[12].mxu0 %vm395_vm0, %v1296_v16 }
  0x2c   : > { %1249 = vmatmul.mubr.msk.bf16.gmra.mrb[12].mxu1 %vm395_vm0, %v1297_v17 }
  0xe6   : > { %v1222_v19 = vpop.f32.mrb[0].mxu0 }
  0xe7   : > { %v614_v21 = vmul.f32 %v1222_v19, %v1416_v18  ;;  %v1238_v22 = vpop.f32.mrb[0].mxu1  ;;  %v478_v23 = vpop.f32.mrb[1].mxu0 }
  0xe8   : > { %v630_v24 = vmul.f32 %v1238_v22, %v1416_v18  ;;  %v612_v25 = vmul.f32 %v1416_v18, %v478_v23  ;;  %v542_v26 = vpop.f32.mrb[1].mxu1  ;;  %v1223_v27 = vpop.f32.mrb[2].mxu0 }
  0xe9   : > { %v653_v28 = vadd.f32 %v1421_v20, %v614_v21  ;;  %v628_v29 = vmul.f32 %v1416_v18, %v542_v26  ;;  %v615_v30 = vmul.f32 %v1223_v27, %v1416_v18  ;;  %v1239_v31 = vpop.f32.mrb[2].mxu1  ;;  %v481_v32 = vpop.f32.mrb[3].mxu0 }
  0xea   : > { %v669_v33 = vadd.f32 %v1421_v20, %v630_v24  ;;  %v651_v34 = vadd.f32 %v1421_v20, %v612_v25  ;;  %v631_v35 = vmul.f32 %v1239_v31, %v1416_v18  ;;  %v613_v36 = vmul.f32 %v1416_v18, %v481_v32  ;;  %v545_v37 = vpop.f32.mrb[3].mxu1 }
  0xeb   : > { %v667_v38 = vadd.f32 %v1421_v20, %v628_v29  ;;  %v654_v39 = vadd.f32 %v1421_v20, %v615_v30  ;;  %v629_v40 = vmul.f32 %v1416_v18, %v545_v37  ;;  %v685_v43 = vmax.f32 %v653_v28, 0.0 }
  0xec   : > { %v670_v41 = vadd.f32 %v1421_v20, %v631_v35  ;;  %v652_v42 = vadd.f32 %v1421_v20, %v613_v36  ;;  %v701_v46 = vmax.f32 %v669_v33, 0.0  ;;  %v683_v47 = vmax.f32 %v651_v34, 0.0 }
  0xed   : > { %v686_v44 = vmax.f32 %v654_v39, 0.0  ;;  %v668_v45 = vadd.f32 %v1421_v20, %v629_v40  ;;  %v699_v51 = vmax.f32 %v667_v38, 0.0 }
  0xee   : > { %v702_v48 = vmax.f32 %v670_v41, 0.0  ;;  %v684_v49 = vmax.f32 %v652_v42, 0.0  ;;  %v1226_v50 = vpop.f32.mrb[4].mxu0 }
  0xef   : > { %v1111_v52 = vpack.c.bf16 %v686_v44, %v685_v43  ;;  %v700_v53 = vmax.f32 %v668_v45, 0.0  ;;  %v618_v54 = vmul.f32 %v1226_v50, %v1416_v18  ;;  %v1242_v55 = vpop.f32.mrb[4].mxu1  ;;  %v494_v56 = vpop.f32.mrb[5].mxu0 }
  0xf0   : > { %v1151_v57 = vpack.c.bf16 %v702_v48, %v701_v46  ;;  %v1106_v58 = vpack.c.bf16 %v684_v49, %v683_v47  ;;  %v634_v59 = vmul.f32 %v1242_v55, %v1416_v18  ;;  %v616_v60 = vmul.f32 %v1416_v18, %v494_v56  ;;  %v558_v61 = vpop.f32.mrb[5].mxu1  ;;  %v1227_v62 = vpop.f32.mrb[6].mxu0 }
  0xf1   : > { %1183 = vst [vmem:[%s1444_s8 + $0x8] sm:$0xff] %v1111_v52   ;;  %v1146_v63 = vpack.c.bf16 %v700_v53, %v699_v51  ;;  %v657_v0 = vadd.f32 %v1421_v20, %v618_v54  ;;  %v632_v1 = vmul.f32 %v1416_v18, %v558_v61  ;;  %v619_v2 = vmul.f32 %v1227_v62, %v1416_v18  ;;  %v1243_v3 = vpop.f32.mrb[6].mxu1  ;;  %v497_v4 = vpop.f32.mrb[7].mxu0 }
  0xf2   : > { %1191 = vst [vmem:[%s1444_s8 + $0x48] sm:$0xff] %v1151_v57   ;;  %1107 = vst [vmem:[%s1444_s8] sm:$0xff] %v1106_v58   ;;  %v673_v5 = vadd.f32 %v1421_v20, %v634_v59  ;;  %v655_v6 = vadd.f32 %v1421_v20, %v616_v60  ;;  %v635_v7 = vmul.f32 %v1243_v3, %v1416_v18  ;;  %v561_v9 = vpop.f32.mrb[7].mxu1 }
  0xf3   : > { %v617_v8 = vmul.f32 %v1416_v18, %v497_v4  ;;  %1190 = vst [vmem:[%s1444_s8 + $0x40] sm:$0xff] %v1146_v63   ;;  %v671_v10 = vadd.f32 %v1421_v20, %v632_v1  ;;  %v658_v11 = vadd.f32 %v1421_v20, %v619_v2  ;;  %v633_v12 = vmul.f32 %v1416_v18, %v561_v9 }
  0xf4   : > { %v674_v13 = vadd.f32 %v1421_v20, %v635_v7  ;;  %v689_v15 = vmax.f32 %v657_v0, 0.0  ;;  %v705_v19 = vmax.f32 %v673_v5, 0.0  ;;  %v687_v21 = vmax.f32 %v655_v6, 0.0 }
  0xf5   : > { %v656_v14 = vadd.f32 %v1421_v20, %v617_v8  ;;  %v690_v16 = vmax.f32 %v658_v11, 0.0  ;;  %v672_v17 = vadd.f32 %v1421_v20, %v633_v12  ;;  %v703_v25 = vmax.f32 %v671_v10, 0.0 }
  0xf6   : > { %v706_v22 = vmax.f32 %v674_v13, 0.0  ;;  %v1230_v24 = vpop.f32.mrb[8].mxu0 }
  0xf7   : > { %v688_v23 = vmax.f32 %v656_v14, 0.0  ;;  %v1121_v26 = vpack.c.bf16 %v690_v16, %v689_v15  ;;  %v704_v27 = vmax.f32 %v672_v17, 0.0  ;;  %v622_v28 = vmul.f32 %v1230_v24, %v1416_v18  ;;  %v1246_v29 = vpop.f32.mrb[8].mxu1  ;;  %v510_v30 = vpop.f32.mrb[9].mxu0 }
  0xf8   : > { %v1161_v31 = vpack.c.bf16 %v706_v22, %v705_v19  ;;  %v638_v33 = vmul.f32 %v1246_v29, %v1416_v18  ;;  %v620_v34 = vmul.f32 %v1416_v18, %v510_v30  ;;  %v574_v35 = vpop.f32.mrb[9].mxu1  ;;  %v1231_v36 = vpop.f32.mrb[10].mxu0 }
  0xf9   : > { %v1116_v32 = vpack.c.bf16 %v688_v23, %v687_v21  ;;  %1185 = vst [vmem:[%s1444_s8 + $0x18] sm:$0xff] %v1121_v26   ;;  %v1156_v37 = vpack.c.bf16 %v704_v27, %v703_v25  ;;  %v661_v38 = vadd.f32 %v1421_v20, %v622_v28  ;;  %v636_v39 = vmul.f32 %v1416_v18, %v574_v35  ;;  %v1247_v41 = vpop.f32.mrb[10].mxu1  ;;  %v513_v42 = vpop.f32.mrb[11].mxu0 }
  0xfa   : > { %v623_v40 = vmul.f32 %v1231_v36, %v1416_v18  ;;  %1193 = vst [vmem:[%s1444_s8 + $0x58] sm:$0xff] %v1161_v31   ;;  %v677_v43 = vadd.f32 %v1421_v20, %v638_v33  ;;  %v659_v44 = vadd.f32 %v1421_v20, %v620_v34  ;;  %v639_v45 = vmul.f32 %v1247_v41, %v1416_v18  ;;  %v577_v47 = vpop.f32.mrb[11].mxu1 }
  0xfb   : > { %1184 = vst [vmem:[%s1444_s8 + $0x10] sm:$0xff] %v1116_v32   ;;  %v621_v46 = vmul.f32 %v1416_v18, %v513_v42  ;;  %1192 = vst [vmem:[%s1444_s8 + $0x50] sm:$0xff] %v1156_v37   ;;  %v675_v48 = vadd.f32 %v1421_v20, %v636_v39  ;;  %v637_v50 = vmul.f32 %v1416_v18, %v577_v47  ;;  %v693_v53 = vmax.f32 %v661_v38, 0.0 }
  0xfc   : > { %v662_v49 = vadd.f32 %v1421_v20, %v623_v40  ;;  %v678_v51 = vadd.f32 %v1421_v20, %v639_v45  ;;  %v709_v56 = vmax.f32 %v677_v43, 0.0  ;;  %v691_v57 = vmax.f32 %v659_v44, 0.0 }
  0xfd   : > { %v660_v52 = vadd.f32 %v1421_v20, %v621_v46  ;;  %v676_v55 = vadd.f32 %v1421_v20, %v637_v50  ;;  %v707_v61 = vmax.f32 %v675_v48, 0.0 }
  0xfe   : > { %v694_v54 = vmax.f32 %v662_v49, 0.0  ;;  %v710_v58 = vmax.f32 %v678_v51, 0.0  ;;  %v1234_v60 = vpop.f32.mrb[12].mxu0 }
  0xff   : > { %v692_v59 = vmax.f32 %v660_v52, 0.0  ;;  %v708_v63 = vmax.f32 %v676_v55, 0.0  ;;  %v626_v0 = vmul.f32 %v1234_v60, %v1416_v18  ;;  %v1250_v1 = vpop.f32.mrb[12].mxu1  ;;  %v526_v2 = vpop.f32.mrb[13].mxu0 }
 0x100   : > { %v1131_v62 = vpack.c.bf16 %v694_v54, %v693_v53  ;;  %v1171_v3 = vpack.c.bf16 %v710_v58, %v709_v56  ;;  %v642_v5 = vmul.f32 %v1250_v1, %v1416_v18  ;;  %v624_v6 = vmul.f32 %v1416_v18, %v526_v2  ;;  %v590_v7 = vpop.f32.mrb[13].mxu1  ;;  %v1235_v8 = vpop.f32.mrb[14].mxu0 }
 0x101   : > { %v1126_v4 = vpack.c.bf16 %v692_v59, %v691_v57  ;;  %v1166_v9 = vpack.c.bf16 %v708_v63, %v707_v61  ;;  %v665_v10 = vadd.f32 %v1421_v20, %v626_v0  ;;  %v640_v11 = vmul.f32 %v1416_v18, %v590_v7  ;;  %v1251_v13 = vpop.f32.mrb[14].mxu1  ;;  %v529_v14 = vpop.f32.mrb[15].mxu0 }
 0x102   : > { %1187 = vst [vmem:[%s1444_s8 + $0x28] sm:$0xff] %v1131_v62   ;;  %v627_v12 = vmul.f32 %v1235_v8, %v1416_v18  ;;  %1195 = vst [vmem:[%s1444_s8 + $0x68] sm:$0xff] %v1171_v3   ;;  %v681_v15 = vadd.f32 %v1421_v20, %v642_v5  ;;  %v663_v16 = vadd.f32 %v1421_v20, %v624_v6  ;;  %v593_v21 = vpop.f32.mrb[15].mxu1 }
 0x103   : > { %1186 = vst [vmem:[%s1444_s8 + $0x20] sm:$0xff] %v1126_v4   ;;  %v643_v17 = vmul.f32 %v1251_v13, %v1416_v18  ;;  %v625_v19 = vmul.f32 %v1416_v18, %v529_v14  ;;  %1194 = vst [vmem:[%s1444_s8 + $0x60] sm:$0xff] %v1166_v9   ;;  %v679_v22 = vadd.f32 %v1421_v20, %v640_v11  ;;  %v697_v27 = vmax.f32 %v665_v10, 0.0 }
 0x104   : > { %v666_v23 = vadd.f32 %v1421_v20, %v627_v12  ;;  %v641_v24 = vmul.f32 %v1416_v18, %v593_v21  ;;  %v713_v30 = vmax.f32 %v681_v15, 0.0  ;;  %v695_v31 = vmax.f32 %v663_v16, 0.0 }
 0x105   : > { %v682_v25 = vadd.f32 %v1421_v20, %v643_v17  ;;  %v664_v26 = vadd.f32 %v1421_v20, %v625_v19  ;;  %v711_v34 = vmax.f32 %v679_v22, 0.0 }
 0x106   : > { %v698_v28 = vmax.f32 %v666_v23, 0.0  ;;  %v680_v29 = vadd.f32 %v1421_v20, %v641_v24 }
 0x107   : > { %v714_v32 = vmax.f32 %v682_v25, 0.0  ;;  %v696_v33 = vmax.f32 %v664_v26, 0.0 }
 0x108   : > { %v1141_v35 = vpack.c.bf16 %v698_v28, %v697_v27  ;;  %v712_v36 = vmax.f32 %v680_v29, 0.0 }
 0x109   : > { %v1181_v37 = vpack.c.bf16 %v714_v32, %v713_v30  ;;  %v1136_v18 = vpack.c.bf16 %v696_v33, %v695_v31 }
 0x10a   : > { %1189 = vst [vmem:[%s1444_s8 + $0x38] sm:$0xff] %v1141_v35   ;;  %v1176_v38 = vpack.c.bf16 %v712_v36, %v711_v34 }
 0x10b   : > { %1197 = vst [vmem:[%s1444_s8 + $0x78] sm:$0xff] %v1181_v37   ;;  %1188 = vst [vmem:[%s1444_s8 + $0x30] sm:$0xff] %v1136_v18  }
 0x10c   : > { %1196 = vst [vmem:[%s1444_s8 + $0x70] sm:$0xff] %v1176_v38  }
 0x10d PF: > { %s14_s17 = sadd.s32 1, %s1320_s17   ;;  %s1524_s15 = smov %s1316_s16 }
 0x10e   : > { %p11_p5 = scmp.ge.s32.totalorder %s14_s17, 4   ;;  %s1525_s16 = smov %s1527_s18 }
 0x110   :  { %13 = sbr.rel (!%p11_p5) target bundleno = 2 (0x2), region = 75 }

// kernel: spatial_path_forward.4
= control target key start
LH: loop header
LB: loop body
LE: loop exit
PB: predicated region body
PF: predicated region fallthrough
CT: control target
= control target key end

     0   :  { %s1494_s15 = smov 0   ;;  %s1496_s16 = smov 0   ;;  %s1682_s0 = inlined_call_operand.vmem [shape: bf16[128,640], index: 0, kind: input, shape index: {}]   ;;  %s1683_s1 = inlined_call_operand.vmem [shape: bf16[640,128], index: 1, kind: input, shape index: {}]   ;;  %s1684_s2 = inlined_call_operand.vmem [shape: f32[1,128], index: 2, kind: input, shape index: {}]   ;;  %s1685_s3 = inlined_call_operand.vmem [shape: f32[1,128], index: 3, kind: input, shape index: {}]   ;;  %s1686_s4 = inlined_call_operand.vmem [shape: bf16[128,128], index: 4, kind: output, shape index: {}]  }
   0x1   :  { %s1498_s17 = smov 0  }
   0x2 LB: > { %s23_s18 = sadd.s32 1, %s1463_s16  ;;  %p1112_p0 = scmp.ge.s32.totalorder %s1467_s17, 1  ;;  %s1467_s17 = sphi %s1498_s17, %s14_s17   ;;  %s1463_s16 = sphi %s1496_s16, %s1688_s16   ;;  %s1459_s15 = sphi %s1494_s15, %s1687_s15  }
   0x3   : > { %p24_p1 = scmp.ge.s32.totalorder %s23_s18, 2  ;;  %p203_p2 = scmp.lt.s32.totalorder %s1467_s17, 3 }
   0x5   : > { %s1690_s18 = smov (%p24_p1, %s23_s18), 0  ;;  %p204_p3 = pnand %p1112_p0, %p203_p2 }
   0x6   : > { %v1377_v0 = vld [vmem:[%s1683_s1 + $0x40] sm:$0xff] (!%p204_p3)   ;;  %v1381_v4 = vld [vmem:[%s1683_s1 + $0x48] sm:$0xff] (!%p204_p3)   ;;  %v1385_v8 = vld [vmem:[%s1683_s1 + $0x50] sm:$0xff] (!%p204_p3)   ;;  %s1113_s27 = sshll.u32 (!%p204_p3), %s1459_s15, 3 }
   0x7   : > { %207 = sbr.rel (%p204_p3) target bundleno = 300 (0x12c), region = 36  ;;  %v1378_v1 = vld [vmem:[%s1683_s1 + $0xc0] sm:$0xff] (!%p204_p3)   ;;  %1220 = vmatprep.subr.bf16.mxu0 (!%p204_p3), %v1377_v0  ;;  %v1382_v5 = vld [vmem:[%s1683_s1 + $0xc8] sm:$0xff] (!%p204_p3)   ;;  %v1386_v9 = vld [vmem:[%s1683_s1 + $0xd0] sm:$0xff] (!%p204_p3)   ;;  %p244_p4 = scmp.lt.s32.totalorder (!%p204_p3), %s1113_s27, 15 }
   0x8   : > { %v1379_v2 = vld [vmem:[%s1683_s1] sm:$0xff] (!%p204_p3)   ;;  %1260 = vmatprep.subr.bf16.mxu1 (!%p204_p3), %v1378_v1  ;;  %v1383_v6 = vld [vmem:[%s1683_s1 + $0x8] sm:$0xff] (!%p204_p3)   ;;  %v1387_v10 = vld [vmem:[%s1683_s1 + $0x10] sm:$0xff] (!%p204_p3)  }
   0x9   : > { %v1380_v3 = vld [vmem:[%s1683_s1 + $0x80] sm:$0xff] (!%p204_p3)   ;;  %1221 = vmatpush3.bf16.msra.mxu0 (!%p204_p3), %v1379_v2  ;;  %v1384_v7 = vld [vmem:[%s1683_s1 + $0x88] sm:$0xff] (!%p204_p3)   ;;  %v1388_v11 = vld [vmem:[%s1683_s1 + $0x90] sm:$0xff] (!%p204_p3)  }
   0xa   : > { %1261 = vmatpush3.bf16.msra.mxu1 (!%p204_p3), %v1380_v3  ;;  %1222 = vmatprep.subr.bf16.mxu0 (!%p204_p3), %v1381_v4  ;;  %v1389_v12 = vld [vmem:[%s1683_s1 + $0x58] sm:$0xff] (!%p204_p3)   ;;  %v1393_v16 = vld [vmem:[%s1683_s1 + $0x60] sm:$0xff] (!%p204_p3)   ;;  %v1397_v20 = vld [vmem:[%s1683_s1 + $0x68] sm:$0xff] (!%p204_p3)  }
   0xb   : > { %1262 = vmatprep.subr.bf16.mxu1 (!%p204_p3), %v1382_v5  ;;  %v1390_v13 = vld [vmem:[%s1683_s1 + $0xd8] sm:$0xff] (!%p204_p3)   ;;  %v1394_v17 = vld [vmem:[%s1683_s1 + $0xe0] sm:$0xff] (!%p204_p3)   ;;  %v1398_v21 = vld [vmem:[%s1683_s1 + $0xe8] sm:$0xff] (!%p204_p3)  }
   0xc   : > { %v1391_v14 = vld [vmem:[%s1683_s1 + $0x18] sm:$0xff] (!%p204_p3)   ;;  %v1395_v18 = vld [vmem:[%s1683_s1 + $0x20] sm:$0xff] (!%p204_p3)   ;;  %v1399_v22 = vld [vmem:[%s1683_s1 + $0x28] sm:$0xff] (!%p204_p3)  }
   0xd   : > { %1223 = vmatpush3.bf16.msra.mxu0 (!%p204_p3), %v1383_v6  ;;  %v1392_v15 = vld [vmem:[%s1683_s1 + $0x98] sm:$0xff] (!%p204_p3)   ;;  %v1396_v19 = vld [vmem:[%s1683_s1 + $0xa0] sm:$0xff] (!%p204_p3)   ;;  %v1400_v23 = vld [vmem:[%s1683_s1 + $0xa8] sm:$0xff] (!%p204_p3)  }
   0xe   : > { %1263 = vmatpush3.bf16.msra.mxu1 %v1384_v7  ;;  %1224 = vmatprep.subr.bf16.mxu0 %v1385_v8  ;;  %s1692_s27 = smov (!%p244_p4, %s1113_s27), 15  ;;  %v1401_v24 = vld [vmem:[%s1683_s1 + $0x70] sm:$0xff]   ;;  %v1405_v28 = vld [vmem:[%s1683_s1 + $0x78] sm:$0xff]   ;;  %v1415_v36 = vld [vmem:[%s1683_s1 + $0x100] sm:$0xff]  }
   0xf   : > { %1264 = vmatprep.subr.bf16.mxu1 %v1386_v9  ;;  %v1402_v25 = vld [vmem:[%s1683_s1 + $0xf0] sm:$0xff]   ;;  %s1352_s28 = smul.u32 20, %s1692_s27  ;;  %v1406_v29 = vld [vmem:[%s1683_s1 + $0xf8] sm:$0xff]   ;;  %v1416_v37 = vld [vmem:[%s1683_s1 + $0x108] sm:$0xff]   ;;  %s1116_s19 = sshll.u32 %s1692_s27, 2 }
  0x10   : > { %v1403_v26 = vld [vmem:[%s1683_s1 + $0x30] sm:$0xff]   ;;  %v1407_v30 = vld [vmem:[%s1683_s1 + $0x38] sm:$0xff]   ;;  %v1431_v46 = vld [vmem:[%s1683_s1 + $0x120] sm:$0xff]   ;;  %s267_s22 = scalar_lea.vmem %s1686_s4, %s1116_s19 }
  0x11   : > { %1225 = vmatpush3.bf16.msra.mxu0 %v1387_v10  ;;  %v1404_v27 = vld [vmem:[%s1683_s1 + $0xb0] sm:$0xff]   ;;  %s1611_s12 = scalar_lea.vmem %s1682_s0, %s1352_s28  ;;  %v1408_v31 = vld [vmem:[%s1683_s1 + $0xb8] sm:$0xff]   ;;  %v1432_v51 = vld [vmem:[%s1683_s1 + $0x128] sm:$0xff]  }
  0x12   : > { %1265 = vmatpush3.bf16.msra.mxu1 %v1388_v11  ;;  %1226 = vmatprep.subr.bf16.mxu0 %v1389_v12  ;;  %v1409_v32 = vld [vmem:[%s1611_s12] ss:$20 sps:$4 sm:$0xff]   ;;  %v1411_v33 = vld [vmem:[%s1611_s12 + $0x4] ss:$20 sps:$4 sm:$0xff]   ;;  %v1412_v34 = vld [vmem:[%s1611_s12 + $0x8] ss:$20 sps:$4 sm:$0xff]  }
  0x13   : > { %1266 = vmatprep.subr.bf16.mxu1 %v1390_v13  ;;  %v1414_v35 = vld [vmem:[%s1611_s12 + $0xc] ss:$20 sps:$4 sm:$0xff]   ;;  %750 = vmatprep.mubr.bf16.mxu0 %v1411_v33  ;;  %v1419_v39 = vld [vmem:[%s1611_s12 + $0x34] ss:$20 sps:$4 sm:$0xff]   ;;  %v1422_v42 = vld [vmem:[%s1611_s12 + $0x30] ss:$20 sps:$4 sm:$0xff]  }
  0x14   : > { %815 = vmatprep.mubr.bf16.mxu1 %v1414_v35  ;;  %v1417_v38 = vld [vmem:[%s1611_s12 + $0x2c] ss:$20 sps:$4 sm:$0xff]   ;;  %v1421_v40 = vld [vmem:[%s1611_s12 + $0x28] ss:$20 sps:$4 sm:$0xff]   ;;  %v1423_v41 = vld [vmem:[%s1683_s1 + $0x110] sm:$0xff]  }
  0x15   : > { %1227 = vmatpush3.bf16.msra.mxu0 %v1391_v14  ;;  %v1425_v43 = vld [vmem:[%s1611_s12 + $0x54] ss:$20 sps:$4 sm:$0xff]   ;;  %v1424_v44 = vld [vmem:[%s1683_s1 + $0x118] sm:$0xff]   ;;  %v1429_v47 = vld [vmem:[%s1611_s12 + $0x50] ss:$20 sps:$4 sm:$0xff]  }
  0x16   : > { %1267 = vmatpush3.bf16.msra.mxu1 %v1392_v15  ;;  %1228 = vmatprep.subr.bf16.mxu0 %v1393_v16  ;;  %v1427_v45 = vld [vmem:[%s1611_s12 + $0x5c] ss:$20 sps:$4 sm:$0xff]   ;;  %v1430_v48 = vld [vmem:[%s1611_s12 + $0x58] ss:$20 sps:$4 sm:$0xff]   ;;  %v1438_v54 = vld [vmem:[%s1611_s12 + $0x80] ss:$20 sps:$4 sm:$0xff]  }
  0x17   : > { %1268 = vmatprep.subr.bf16.mxu1 %v1394_v17  ;;  %v1433_v49 = vld [vmem:[%s1611_s12 + $0x7c] ss:$20 sps:$4 sm:$0xff]   ;;  %v1435_v50 = vld [vmem:[%s1611_s12 + $0x84] ss:$20 sps:$4 sm:$0xff]   ;;  %v1442_v56 = vld [vmem:[%s1611_s12 + $0x60] ss:$20 sps:$4 sm:$0xff]  }
  0x18   : > { %v1439_v52 = vld [vmem:[%s1683_s1 + $0x130] sm:$0xff]   ;;  %v1437_v53 = vld [vmem:[%s1611_s12 + $0x78] ss:$20 sps:$4 sm:$0xff]   ;;  %v1444_v59 = vld [vmem:[%s1611_s12 + $0x88] ss:$20 sps:$4 sm:$0xff]  }
  0x19   : > { %1229 = vmatpush3.bf16.msra.mxu0 %v1395_v18  ;;  %v1441_v55 = vld [vmem:[%s1611_s12 + $0x10] ss:$20 sps:$4 sm:$0xff]   ;;  %v1440_v57 = vld [vmem:[%s1683_s1 + $0x138] sm:$0xff]  }
  0x1a   : > { %1269 = vmatpush3.bf16.msra.mxu1 %v1396_v19  ;;  %1230 = vmatprep.subr.bf16.mxu0 %v1397_v20  ;;  %v1443_v58 = vld [vmem:[%s1611_s12 + $0x38] ss:$20 sps:$4 sm:$0xff]  }
  0x1b   : > { %1270 = vmatprep.subr.bf16.mxu1 %v1398_v21 }
  0x1d   : > { %1231 = vmatpush3.bf16.msra.mxu0 %v1399_v22 }
  0x1e   : > { %1271 = vmatpush3.bf16.msra.mxu1 %v1400_v23  ;;  %1232 = vmatprep.subr.bf16.mxu0 %v1401_v24 }
  0x1f   : > { %1272 = vmatprep.subr.bf16.mxu1 %v1402_v25 }
  0x21   : > { %1233 = vmatpush3.bf16.msra.mxu0 %v1403_v26 }
  0x22   : > { %1273 = vmatpush3.bf16.msra.mxu1 %v1404_v27  ;;  %1234 = vmatprep.subr.bf16.mxu0 %v1405_v28 }
  0x23   : > { %1274 = vmatprep.subr.bf16.mxu1 %v1406_v29 }
  0x25   : > { %1235 = vmatpush3.bf16.msra.mxu0 %v1407_v30 }
  0x26   : > { %1275 = vmatpush3.bf16.msra.mxu1 %v1408_v31  ;;  %1312 = vmatprep.subr.bf16.mxu0 %v1415_v36 }
  0x27   : > { %1336 = vmatprep.subr.bf16.mxu1 %v1415_v36 }
  0x28   : > { %751 = vmatmul.mubr.bf16.vlgmr.msra.gmra.mrb[0].mxu0 %v1409_v32 }
  0x29   : > { %816 = vmatmul.mubr.bf16.vlgmr.msra.gmra.mrb[0].mxu1 %v1412_v34  ;;  %1313 = vmatpush3.bf16.msra.mxu0 %v1415_v36 }
  0x2a   : > { %1344 = vmatpush3.bf16.msra.mxu1 %v1415_v36  ;;  %1314 = vmatprep.subr.bf16.mxu0 %v1416_v37 }
  0x2b   : > { %1337 = vmatprep.subr.bf16.mxu1 %v1416_v37  ;;  %758 = vmatprep.mubr.bf16.mxu0 %v1417_v38 }
  0x2c   : > { %823 = vmatprep.mubr.bf16.mxu1 %v1419_v39 }
  0x2d   : > { %1315 = vmatpush3.bf16.msra.mxu0 %v1416_v37 }
  0x2e   : > { %1345 = vmatpush3.bf16.msra.mxu1 %v1416_v37  ;;  %1316 = vmatprep.subr.bf16.mxu0 %v1423_v41 }
  0x2f   : > { %1338 = vmatprep.subr.bf16.mxu1 %v1423_v41 }
  0x30   : > { %759 = vmatmul.mubr.bf16.gmra.mrb[4].mxu0 %v1421_v40 }
  0x31   : > { %824 = vmatmul.mubr.bf16.gmra.mrb[4].mxu1 %v1422_v42  ;;  %766 = vmatprep.mubr.bf16.mxu0 %v1425_v43 }
  0x32   : > { %1317 = vmatpush3.bf16.msra.mxu0 %v1423_v41  ;;  %831 = vmatprep.mubr.bf16.mxu1 %v1427_v45 }
  0x33   : > { %1346 = vmatpush3.bf16.msra.mxu1 %v1423_v41  ;;  %1318 = vmatprep.subr.bf16.mxu0 %v1424_v44 }
  0x34   : > { %1339 = vmatprep.subr.bf16.mxu1 %v1424_v44 }
  0x36   : > { %1319 = vmatpush3.bf16.msra.mxu0 %v1424_v44 }
  0x37   : > { %1347 = vmatpush3.bf16.msra.mxu1 %v1424_v44  ;;  %1320 = vmatprep.subr.bf16.mxu0 %v1431_v46 }
  0x38   : > { %767 = vmatmul.mubr.bf16.gmra.mrb[8].mxu0 %v1429_v47  ;;  %1340 = vmatprep.subr.bf16.mxu1 %v1431_v46 }
  0x39   : > { %832 = vmatmul.mubr.bf16.gmra.mrb[8].mxu1 %v1430_v48  ;;  %774 = vmatprep.mubr.bf16.mxu0 %v1433_v49 }
  0x3a   : > { %1321 = vmatpush3.bf16.msra.mxu0 %v1431_v46  ;;  %839 = vmatprep.mubr.bf16.mxu1 %v1435_v50 }
  0x3b   : > { %1348 = vmatpush3.bf16.msra.mxu1 %v1431_v46  ;;  %1322 = vmatprep.subr.bf16.mxu0 %v1432_v51 }
  0x3c   : > { %1341 = vmatprep.subr.bf16.mxu1 %v1432_v51 }
  0x3e   : > { %1323 = vmatpush3.bf16.msra.mxu0 %v1432_v51 }
  0x3f   : > { %1349 = vmatpush3.bf16.msra.mxu1 %v1432_v51  ;;  %1324 = vmatprep.subr.bf16.mxu0 %v1439_v52 }
  0x40   : > { %775 = vmatmul.mubr.bf16.gmra.mrb[12].mxu0 %v1437_v53  ;;  %1342 = vmatprep.subr.bf16.mxu1 %v1439_v52  ;;  %v1177_v53 = vld [vmem:[%s1684_s2] ss:$0 sm:$0xff] }
  0x41   : > { %840 = vmatmul.mubr.bf16.gmra.mrb[12].mxu1 %v1438_v54  ;;  %1328 = vmatprep.mubr.bf16.mxu0 %v1441_v55 }
  0x42   : > { %1325 = vmatpush3.bf16.msra.mxu0 %v1439_v52  ;;  %1332 = vmatprep.mubr.bf16.mxu1 %v1442_v56 }
  0x43   : > { %1350 = vmatpush3.bf16.msra.mxu1 %v1439_v52  ;;  %1326 = vmatprep.subr.bf16.mxu0 %v1440_v57 }
  0x44   : > { %1343 = vmatprep.subr.bf16.mxu1 %v1440_v57 }
  0x46   : > { %1327 = vmatpush3.bf16.msra.mxu0 %v1440_v57 }
  0x47   : > { %1351 = vmatpush3.bf16.msra.mxu1 %v1440_v57  ;;  %v1178_v57 = vld [vmem:[%s1685_s3] ss:$0 sm:$0xff] }
  0x49   : > { %1329 = vmatmul.mubr.bf16.vlgmr.msra.gmra.mrb[16].mxu0 %v1443_v58 }
  0x4a   : > { %1333 = vmatmul.mubr.bf16.vlgmr.msra.gmra.mrb[16].mxu1 %v1444_v59 }
  0xfb   : > { %v1236_v60 = vpop.f32.mrb[0].mxu0 }
  0xfc   : > { %v1276_v61 = vpop.f32.mrb[0].mxu1  ;;  %v1237_v62 = vpop.f32.mrb[1].mxu0 }
  0xfd   : > { %v1238_v63 = vadd.f32 %v1237_v62, %v1236_v60  ;;  %v1277_v0 = vpop.f32.mrb[1].mxu1  ;;  %v1239_v1 = vpop.f32.mrb[2].mxu0 }
  0xfe   : > { %v1278_v2 = vadd.f32 %v1277_v0, %v1276_v61  ;;  %v1279_v3 = vpop.f32.mrb[2].mxu1  ;;  %v1240_v4 = vpop.f32.mrb[3].mxu0 }
  0xff   : > { %v1241_v5 = vadd.f32 %v1240_v4, %v1239_v1  ;;  %v1280_v6 = vpop.f32.mrb[3].mxu1 }
 0x100   : > { %v1281_v7 = vadd.f32 %v1280_v6, %v1279_v3  ;;  %v818_v8 = vadd.f32 %v1278_v2, %v1238_v63 }
 0x102   : > { %v821_v9 = vadd.f32 %v1281_v7, %v1241_v5 }
 0x103   : > { %v1242_v10 = vpop.f32.mrb[4].mxu0 }
 0x104   : > { %v1282_v11 = vpop.f32.mrb[4].mxu1  ;;  %v1243_v12 = vpop.f32.mrb[5].mxu0 }
 0x105   : > { %v1244_v13 = vadd.f32 %v1243_v12, %v1242_v10  ;;  %v1283_v14 = vpop.f32.mrb[5].mxu1  ;;  %v1245_v15 = vpop.f32.mrb[6].mxu0 }
 0x106   : > { %v1284_v16 = vadd.f32 %v1283_v14, %v1282_v11  ;;  %v1285_v17 = vpop.f32.mrb[6].mxu1  ;;  %v1246_v18 = vpop.f32.mrb[7].mxu0 }
 0x107   : > { %v1247_v19 = vadd.f32 %v1246_v18, %v1245_v15  ;;  %v1286_v20 = vpop.f32.mrb[7].mxu1 }
 0x108   : > { %v1287_v21 = vadd.f32 %v1286_v20, %v1285_v17  ;;  %v826_v22 = vadd.f32 %v1284_v16, %v1244_v13 }
 0x10a   : > { %v829_v23 = vadd.f32 %v1287_v21, %v1247_v19 }
 0x10b   : > { %v1248_v24 = vpop.f32.mrb[8].mxu0 }
 0x10c   : > { %v1288_v25 = vpop.f32.mrb[8].mxu1  ;;  %v1249_v26 = vpop.f32.mrb[9].mxu0 }
 0x10d   : > { %v1250_v27 = vadd.f32 %v1249_v26, %v1248_v24  ;;  %v1289_v28 = vpop.f32.mrb[9].mxu1  ;;  %v1251_v29 = vpop.f32.mrb[10].mxu0 }
 0x10e   : > { %v1290_v30 = vadd.f32 %v1289_v28, %v1288_v25  ;;  %v1291_v31 = vpop.f32.mrb[10].mxu1  ;;  %v1252_v32 = vpop.f32.mrb[11].mxu0 }
 0x10f   : > { %v1253_v33 = vadd.f32 %v1252_v32, %v1251_v29  ;;  %v1292_v34 = vpop.f32.mrb[11].mxu1 }
 0x110   : > { %v1293_v35 = vadd.f32 %v1292_v34, %v1291_v31  ;;  %v834_v36 = vadd.f32 %v1290_v30, %v1250_v27 }
 0x112   : > { %v837_v37 = vadd.f32 %v1293_v35, %v1253_v33 }
 0x113   : > { %v1254_v38 = vpop.f32.mrb[12].mxu0 }
 0x114   : > { %v1294_v39 = vpop.f32.mrb[12].mxu1  ;;  %v1255_v40 = vpop.f32.mrb[13].mxu0 }
 0x115   : > { %v1256_v41 = vadd.f32 %v1255_v40, %v1254_v38  ;;  %v1295_v42 = vpop.f32.mrb[13].mxu1  ;;  %v1257_v43 = vpop.f32.mrb[14].mxu0 }
 0x116   : > { %v1296_v44 = vadd.f32 %v1295_v42, %v1294_v39  ;;  %v1297_v45 = vpop.f32.mrb[14].mxu1  ;;  %v1258_v46 = vpop.f32.mrb[15].mxu0 }
 0x117   : > { %v1259_v47 = vadd.f32 %v1258_v46, %v1257_v43  ;;  %v1298_v48 = vpop.f32.mrb[15].mxu1 }
 0x118   : > { %v1299_v49 = vadd.f32 %v1298_v48, %v1297_v45  ;;  %v842_v50 = vadd.f32 %v1296_v44, %v1256_v41 }
 0x11a   : > { %v845_v51 = vadd.f32 %v1299_v49, %v1259_v47 }
 0x11c   : > { %v1330_v52 = vpop.f32.mrb[16].mxu0 }
 0x11d   : > { %v891_v54 = vadd.f32 %v1330_v52, %v826_v22  ;;  %v1334_v55 = vpop.f32.mrb[16].mxu1  ;;  %v882_v56 = vpop.f32.mrb[17].mxu0 }
 0x11e   : > { %v907_v58 = vadd.f32 %v1334_v55, %v842_v50  ;;  %v883_v59 = vadd.f32 %v882_v56, %v818_v8  ;;  %v898_v60 = vpop.f32.mrb[17].mxu1  ;;  %v1331_v61 = vpop.f32.mrb[18].mxu0 }
 0x11f   : > { %v922_v62 = vmul.f32 %v1177_v53, %v891_v54  ;;  %v899_v63 = vadd.f32 %v898_v60, %v834_v36  ;;  %v894_v0 = vadd.f32 %v1331_v61, %v829_v23  ;;  %v1335_v1 = vpop.f32.mrb[18].mxu1  ;;  %v885_v2 = vpop.f32.mrb[19].mxu0 }
 0x120   : > { %v926_v3 = vmul.f32 %v1177_v53, %v907_v58  ;;  %v920_v4 = vmul.f32 %v1177_v53, %v883_v59  ;;  %v910_v5 = vadd.f32 %v1335_v1, %v845_v51  ;;  %v886_v6 = vadd.f32 %v885_v2, %v821_v9  ;;  %v901_v7 = vpop.f32.mrb[19].mxu1 }
 0x121   : > { %v937_v10 = vadd.f32 %v1178_v57, %v922_v62  ;;  %v924_v11 = vmul.f32 %v1177_v53, %v899_v63  ;;  %v923_v12 = vmul.f32 %v1177_v53, %v894_v0  ;;  %v902_v13 = vadd.f32 %v901_v7, %v837_v37 }
 0x122   : > { %v941_v14 = vadd.f32 %v1178_v57, %v926_v3  ;;  %v935_v15 = vadd.f32 %v1178_v57, %v920_v4  ;;  %v927_v8 = vmul.f32 %v1177_v53, %v910_v5  ;;  %v921_v16 = vmul.f32 %v1177_v53, %v886_v6 }
 0x123   : > { %v939_v17 = vadd.f32 %v1178_v57, %v924_v11  ;;  %v938_v18 = vadd.f32 %v1178_v57, %v923_v12  ;;  %v925_v19 = vmul.f32 %v1177_v53, %v902_v13  ;;  %v945_v22 = vmax.f32 %v937_v10, 0.0 }
 0x124   : > { %v942_v20 = vadd.f32 %v1178_v57, %v927_v8  ;;  %v936_v21 = vadd.f32 %v1178_v57, %v921_v16  ;;  %v949_v25 = vmax.f32 %v941_v14, 0.0  ;;  %v943_v9 = vmax.f32 %v935_v15, 0.0 }
 0x125   : > { %v946_v23 = vmax.f32 %v938_v18, 0.0  ;;  %v940_v24 = vadd.f32 %v1178_v57, %v925_v19  ;;  %v947_v28 = vmax.f32 %v939_v17, 0.0 }
 0x126   : > { %v950_v26 = vmax.f32 %v942_v20, 0.0  ;;  %v944_v27 = vmax.f32 %v936_v21, 0.0 }
 0x127   : > { %v1205_v29 = vpack.c.bf16 %v946_v23, %v945_v22  ;;  %v948_v30 = vmax.f32 %v940_v24, 0.0 }
 0x128   : > { %v1215_v31 = vpack.c.bf16 %v950_v26, %v949_v25  ;;  %v1200_v32 = vpack.c.bf16 %v944_v27, %v943_v9 }
 0x129   : > { %1217 = vst [vmem:[%s267_s22 + $0x8] sm:$0xff] %v1205_v29   ;;  %v1210_v33 = vpack.c.bf16 %v948_v30, %v947_v28 }
 0x12a   : > { %1219 = vst [vmem:[%s267_s22 + $0x18] sm:$0xff] %v1215_v31   ;;  %1201 = vst [vmem:[%s267_s22] sm:$0xff] %v1200_v32  }
 0x12b   : > { %1218 = vst [vmem:[%s267_s22 + $0x10] sm:$0xff] %v1210_v33  }
 0x12c PF: > { %s14_s17 = sadd.s32 1, %s1467_s17   ;;  %s1687_s15 = smov %s1463_s16 }
 0x12d   : > { %p11_p5 = scmp.ge.s32.totalorder %s14_s17, 4   ;;  %s1688_s16 = smov %s1690_s18 }
 0x12f   :  { %13 = sbr.rel (!%p11_p5) target bundleno = 2 (0x2), region = 75 }

// kernel: spatial_path_forward.5
= control target key start
LH: loop header
LB: loop body
LE: loop exit
PB: predicated region body
PF: predicated region fallthrough
CT: control target
= control target key end

     0   :  { %s2078_s15 = smov 0   ;;  %s2080_s16 = smov 0   ;;  %s2567_s0 = inlined_call_operand.vmem [shape: bf16[32,1152], index: 0, kind: input, shape index: {}]   ;;  %s2568_s1 = inlined_call_operand.vmem [shape: bf16[1152,256], index: 1, kind: input, shape index: {}]   ;;  %s2569_s2 = inlined_call_operand.vmem [shape: f32[1,256], index: 2, kind: input, shape index: {}]   ;;  %s2570_s3 = inlined_call_operand.vmem [shape: f32[1,256], index: 3, kind: input, shape index: {}]   ;;  %s2571_s4 = inlined_call_operand.vmem [shape: f32[32,256], index: 4, kind: output, shape index: {}]  }
   0x1   :  { %s2082_s17 = smov 0  }
   0x2 LB: > { %s23_s18 = sadd.s32 1, %s2046_s16  ;;  %p1595_p0 = scmp.ge.s32.totalorder %s2050_s17, 1  ;;  %s2050_s17 = sphi %s2082_s17, %s14_s17   ;;  %s2046_s16 = sphi %s2080_s16, %s2573_s16   ;;  %s2042_s15 = sphi %s2078_s15, %s2572_s15  }
   0x3   : > { %p24_p1 = scmp.ge.s32.totalorder %s23_s18, 2  ;;  %p209_p2 = scmp.lt.s32.totalorder %s2050_s17, 3 }
   0x5   : > { %s2575_s18 = smov (%p24_p1, %s23_s18), 0  ;;  %p210_p3 = pnand %p1595_p0, %p209_p2 }
   0x6   : > { %v1799_v0 = vld [vmem:[%s2568_s1 + $0x4] ss:$8 sps:$4 sm:$0xff] (!%p210_p3)   ;;  %v1803_v2 = vld [vmem:[%s2568_s1] ss:$8 sps:$4 sm:$0xff] (!%p210_p3)   ;;  %v1805_v4 = vld [vmem:[%s2568_s1 + $0x14] ss:$8 sps:$4 sm:$0xff] (!%p210_p3)  }
   0x7   : > { %213 = sbr.rel (%p210_p3) target bundleno = 392 (0x188), region = 36  ;;  %v1801_v1 = vld [vmem:[%s2568_s1 + $0x204] ss:$8 sps:$4 sm:$0xff] (!%p210_p3)   ;;  %1210 = vmatprep.subr.bf16.mxu1 (!%p210_p3), %v1799_v0  ;;  %v1804_v3 = vld [vmem:[%s2568_s1 + $0x200] ss:$8 sps:$4 sm:$0xff] (!%p210_p3)   ;;  %s1596_s9 = sshll.u32 (!%p210_p3), %s2042_s15, 1 }
   0x8   : > { %1296 = vmatprep.subr.bf16.mxu0 (!%p210_p3), %v1801_v1  ;;  %1211 = vmatpush1.bf16.msra.mxu1 (!%p210_p3), %v1803_v2  ;;  %v1807_v5 = vld [vmem:[%s2568_s1 + $0x214] ss:$8 sps:$4 sm:$0xff] (!%p210_p3)   ;;  %v1809_v6 = vld [vmem:[%s2568_s1 + $0x10] ss:$8 sps:$4 sm:$0xff] (!%p210_p3)   ;;  %v1811_v8 = vld [vmem:[%s2568_s1 + $0x24] ss:$8 sps:$4 sm:$0xff] (!%p210_p3)  }
   0x9   : > { %1297 = vmatpush1.bf16.msra.mxu0 (!%p210_p3), %v1804_v3  ;;  %1212 = vmatprep.subr.bf16.mxu1 (!%p210_p3), %v1805_v4  ;;  %v1810_v7 = vld [vmem:[%s2568_s1 + $0x210] ss:$8 sps:$4 sm:$0xff] (!%p210_p3)   ;;  %v1813_v9 = vld [vmem:[%s2568_s1 + $0x224] ss:$8 sps:$4 sm:$0xff] (!%p210_p3)   ;;  %v1815_v10 = vld [vmem:[%s2568_s1 + $0x20] ss:$8 sps:$4 sm:$0xff] (!%p210_p3)  }
   0xa   : > { %1298 = vmatprep.subr.bf16.mxu0 (!%p210_p3), %v1807_v5  ;;  %v1816_v11 = vld [vmem:[%s2568_s1 + $0x220] ss:$8 sps:$4 sm:$0xff] (!%p210_p3)   ;;  %v1817_v12 = vld [vmem:[%s2568_s1 + $0x34] ss:$8 sps:$4 sm:$0xff] (!%p210_p3)   ;;  %v1821_v14 = vld [vmem:[%s2568_s1 + $0x30] ss:$8 sps:$4 sm:$0xff] (!%p210_p3)  }
   0xb   : > { %v1819_v13 = vld [vmem:[%s2568_s1 + $0x234] ss:$8 sps:$4 sm:$0xff] (!%p210_p3)   ;;  %v1822_v15 = vld [vmem:[%s2568_s1 + $0x230] ss:$8 sps:$4 sm:$0xff] (!%p210_p3)   ;;  %v1823_v16 = vld [vmem:[%s2568_s1 + $0x44] ss:$8 sps:$4 sm:$0xff] (!%p210_p3)  }
   0xc   : > { %1213 = vmatpush1.bf16.msra.mxu1 (!%p210_p3), %v1809_v6  ;;  %v1825_v17 = vld [vmem:[%s2568_s1 + $0x244] ss:$8 sps:$4 sm:$0xff] (!%p210_p3)   ;;  %v1827_v18 = vld [vmem:[%s2568_s1 + $0x40] ss:$8 sps:$4 sm:$0xff] (!%p210_p3)   ;;  %v1829_v20 = vld [vmem:[%s2568_s1 + $0x54] ss:$8 sps:$4 sm:$0xff] (!%p210_p3)  }
   0xd   : > { %1299 = vmatpush1.bf16.msra.mxu0 (!%p210_p3), %v1810_v7  ;;  %1214 = vmatprep.subr.bf16.mxu1 (!%p210_p3), %v1811_v8  ;;  %v1828_v19 = vld [vmem:[%s2568_s1 + $0x240] ss:$8 sps:$4 sm:$0xff] (!%p210_p3)   ;;  %v1831_v21 = vld [vmem:[%s2568_s1 + $0x254] ss:$8 sps:$4 sm:$0xff] (!%p210_p3)   ;;  %v1833_v22 = vld [vmem:[%s2568_s1 + $0x50] ss:$8 sps:$4 sm:$0xff] (!%p210_p3)  }
   0xe   : > { %1300 = vmatprep.subr.bf16.mxu0 %v1813_v9  ;;  %v1834_v23 = vld [vmem:[%s2568_s1 + $0x250] ss:$8 sps:$4 sm:$0xff]   ;;  %v1835_v24 = vld [vmem:[%s2568_s1 + $0x64] ss:$8 sps:$4 sm:$0xff]   ;;  %v1839_v26 = vld [vmem:[%s2568_s1 + $0x60] ss:$8 sps:$4 sm:$0xff]  }
   0xf   : > { %v1837_v25 = vld [vmem:[%s2568_s1 + $0x264] ss:$8 sps:$4 sm:$0xff]   ;;  %v1840_v27 = vld [vmem:[%s2568_s1 + $0x260] ss:$8 sps:$4 sm:$0xff]   ;;  %v1841_v28 = vld [vmem:[%s2568_s1 + $0x74] ss:$8 sps:$4 sm:$0xff]  }
  0x10   : > { %1215 = vmatpush1.bf16.msra.mxu1 %v1815_v10  ;;  %v1843_v29 = vld [vmem:[%s2568_s1 + $0x274] ss:$8 sps:$4 sm:$0xff]   ;;  %v1845_v30 = vld [vmem:[%s2568_s1 + $0x70] ss:$8 sps:$4 sm:$0xff]   ;;  %v1847_v32 = vld [vmem:[%s2568_s1 + $0x84] ss:$8 sps:$4 sm:$0xff]  }
  0x11   : > { %1301 = vmatpush1.bf16.msra.mxu0 %v1816_v11  ;;  %1216 = vmatprep.subr.bf16.mxu1 %v1817_v12  ;;  %v1846_v31 = vld [vmem:[%s2568_s1 + $0x270] ss:$8 sps:$4 sm:$0xff]   ;;  %p255_p4 = scmp.lt.s32.totalorder %s1596_s9, 3  ;;  %v1849_v33 = vld [vmem:[%s2568_s1 + $0x284] ss:$8 sps:$4 sm:$0xff]  }
  0x12   : > { %1302 = vmatprep.subr.bf16.mxu0 %v1819_v13  ;;  %v1851_v34 = vld [vmem:[%s2568_s1 + $0x80] ss:$8 sps:$4 sm:$0xff]   ;;  %v1853_v36 = vld [vmem:[%s2568_s1 + $0x94] ss:$8 sps:$4 sm:$0xff]   ;;  %v1857_v38 = vld [vmem:[%s2568_s1 + $0x90] ss:$8 sps:$4 sm:$0xff]  }
  0x13   : > { %v1852_v35 = vld [vmem:[%s2568_s1 + $0x280] ss:$8 sps:$4 sm:$0xff]   ;;  %s2577_s9 = smov (!%p255_p4, %s1596_s9), 3  ;;  %v1855_v37 = vld [vmem:[%s2568_s1 + $0x294] ss:$8 sps:$4 sm:$0xff]  }
  0x14   : > { %1217 = vmatpush1.bf16.msra.mxu1 %v1821_v14  ;;  %v1858_v39 = vld [vmem:[%s2568_s1 + $0x290] ss:$8 sps:$4 sm:$0xff]   ;;  %v1859_v40 = vld [vmem:[%s2568_s1 + $0xa4] ss:$8 sps:$4 sm:$0xff]   ;;  %s1773_s10 = smul.u32 36, %s2577_s9 }
  0x15   : > { %1303 = vmatpush1.bf16.msra.mxu0 %v1822_v15  ;;  %1218 = vmatprep.subr.bf16.mxu1 %v1823_v16  ;;  %v1861_v41 = vld [vmem:[%s2568_s1 + $0x2a4] ss:$8 sps:$4 sm:$0xff]   ;;  %v1863_v42 = vld [vmem:[%s2568_s1 + $0xa0] ss:$8 sps:$4 sm:$0xff]   ;;  %v1865_v44 = vld [vmem:[%s2568_s1 + $0xb4] ss:$8 sps:$4 sm:$0xff]  }
  0x16   : > { %1304 = vmatprep.subr.bf16.mxu0 %v1825_v17  ;;  %v1864_v43 = vld [vmem:[%s2568_s1 + $0x2a0] ss:$8 sps:$4 sm:$0xff]   ;;  %s2240_s24 = scalar_lea.vmem %s2567_s0, %s1773_s10  ;;  %v1867_v45 = vld [vmem:[%s2568_s1 + $0x2b4] ss:$8 sps:$4 sm:$0xff]   ;;  %v1869_v46 = vld [vmem:[%s2568_s1 + $0xb0] ss:$8 sps:$4 sm:$0xff]  }
  0x17   : > { %v1870_v47 = vld [vmem:[%s2568_s1 + $0x2b0] ss:$8 sps:$4 sm:$0xff]   ;;  %v1897_v48 = vld [vmem:[%s2240_s24 + $0x4] ss:$36 sps:$4 sm:$0xff]   ;;  %v1877_v54 = vld [vmem:[%s2568_s1 + $0xd4] ss:$8 sps:$4 sm:$0xff]  }
  0x18   : > { %1219 = vmatpush1.bf16.msra.mxu1 %v1827_v18  ;;  %v1871_v49 = vld [vmem:[%s2568_s1 + $0xc4] ss:$8 sps:$4 sm:$0xff]   ;;  %1242 = vmatprep.mubr.bf16.mxu1 %v1897_v48  ;;  %v1903_v51 = vld [vmem:[%s2240_s24 + $0x14] ss:$36 sps:$4 sm:$0xff]   ;;  %v1875_v52 = vld [vmem:[%s2568_s1 + $0xc0] ss:$8 sps:$4 sm:$0xff]  }
  0x19   : > { %1305 = vmatpush1.bf16.msra.mxu0 %v1828_v19  ;;  %1220 = vmatprep.subr.bf16.mxu1 %v1829_v20  ;;  %v1873_v50 = vld [vmem:[%s2568_s1 + $0x2c4] ss:$8 sps:$4 sm:$0xff]   ;;  %v1876_v53 = vld [vmem:[%s2568_s1 + $0x2c0] ss:$8 sps:$4 sm:$0xff]   ;;  %v1879_v55 = vld [vmem:[%s2568_s1 + $0x2d4] ss:$8 sps:$4 sm:$0xff]  }
  0x1a   : > { %1306 = vmatprep.subr.bf16.mxu0 %v1831_v21  ;;  %1328 = vmatprep.mubr.bf16.mxu0 %v1903_v51  ;;  %v1881_v56 = vld [vmem:[%s2568_s1 + $0xd0] ss:$8 sps:$4 sm:$0xff]   ;;  %v1883_v58 = vld [vmem:[%s2568_s1 + $0xe4] ss:$8 sps:$4 sm:$0xff]   ;;  %v1887_v60 = vld [vmem:[%s2568_s1 + $0xe0] ss:$8 sps:$4 sm:$0xff]  }
  0x1b   : > { %v1882_v57 = vld [vmem:[%s2568_s1 + $0x2d0] ss:$8 sps:$4 sm:$0xff]   ;;  %v1885_v59 = vld [vmem:[%s2568_s1 + $0x2e4] ss:$8 sps:$4 sm:$0xff]   ;;  %v1888_v61 = vld [vmem:[%s2568_s1 + $0x2e0] ss:$8 sps:$4 sm:$0xff]  }
  0x1c   : > { %1221 = vmatpush1.bf16.msra.mxu1 %v1833_v22  ;;  %v1889_v62 = vld [vmem:[%s2568_s1 + $0xf4] ss:$8 sps:$4 sm:$0xff]   ;;  %v1893_v0 = vld [vmem:[%s2568_s1 + $0xf0] ss:$8 sps:$4 sm:$0xff]   ;;  %v1900_v2 = vld [vmem:[%s2568_s1 + $0x104] ss:$8 sps:$4 sm:$0xff]  }
  0x1d   : > { %1307 = vmatpush1.bf16.msra.mxu0 %v1834_v23  ;;  %1222 = vmatprep.subr.bf16.mxu1 %v1835_v24  ;;  %v1891_v63 = vld [vmem:[%s2568_s1 + $0x2f4] ss:$8 sps:$4 sm:$0xff]   ;;  %v1894_v1 = vld [vmem:[%s2568_s1 + $0x2f0] ss:$8 sps:$4 sm:$0xff]   ;;  %v1906_v3 = vld [vmem:[%s2568_s1 + $0x304] ss:$8 sps:$4 sm:$0xff]  }
  0x1e   : > { %1308 = vmatprep.subr.bf16.mxu0 %v1837_v25  ;;  %v1895_v4 = vld [vmem:[%s2240_s24] ss:$36 sps:$4 sm:$0xff]   ;;  %v1901_v6 = vld [vmem:[%s2240_s24 + $0x10] ss:$36 sps:$4 sm:$0xff]  }
  0x1f   : > { %v1898_v5 = vld [vmem:[%s2568_s1 + $0x100] ss:$8 sps:$4 sm:$0xff]   ;;  %v1909_v8 = vld [vmem:[%s2568_s1 + $0x114] ss:$8 sps:$4 sm:$0xff]   ;;  %v1907_v10 = vld [vmem:[%s2568_s1 + $0x110] ss:$8 sps:$4 sm:$0xff]  }
  0x20   : > { %1223 = vmatpush1.bf16.msra.mxu1 %v1839_v26  ;;  %v1904_v7 = vld [vmem:[%s2568_s1 + $0x300] ss:$8 sps:$4 sm:$0xff]   ;;  %v1912_v9 = vld [vmem:[%s2568_s1 + $0x314] ss:$8 sps:$4 sm:$0xff]   ;;  %v1910_v11 = vld [vmem:[%s2568_s1 + $0x310] ss:$8 sps:$4 sm:$0xff]  }
  0x21   : > { %1309 = vmatpush1.bf16.msra.mxu0 %v1840_v27  ;;  %1224 = vmatprep.subr.bf16.mxu1 %v1841_v28  ;;  %v1915_v12 = vld [vmem:[%s2568_s1 + $0x124] ss:$8 sps:$4 sm:$0xff]   ;;  %v1913_v14 = vld [vmem:[%s2568_s1 + $0x120] ss:$8 sps:$4 sm:$0xff]   ;;  %v1921_v16 = vld [vmem:[%s2568_s1 + $0x134] ss:$8 sps:$4 sm:$0xff]  }
  0x22   : > { %1310 = vmatprep.subr.bf16.mxu0 %v1843_v29  ;;  %v1918_v13 = vld [vmem:[%s2568_s1 + $0x324] ss:$8 sps:$4 sm:$0xff]   ;;  %v1916_v15 = vld [vmem:[%s2568_s1 + $0x320] ss:$8 sps:$4 sm:$0xff]   ;;  %v1924_v17 = vld [vmem:[%s2568_s1 + $0x334] ss:$8 sps:$4 sm:$0xff]  }
  0x23   : > { %v1919_v18 = vld [vmem:[%s2568_s1 + $0x130] ss:$8 sps:$4 sm:$0xff]   ;;  %v1927_v20 = vld [vmem:[%s2568_s1 + $0x144] ss:$8 sps:$4 sm:$0xff]   ;;  %v1925_v22 = vld [vmem:[%s2568_s1 + $0x140] ss:$8 sps:$4 sm:$0xff]  }
  0x24   : > { %1225 = vmatpush1.bf16.msra.mxu1 %v1845_v30  ;;  %v1922_v19 = vld [vmem:[%s2568_s1 + $0x330] ss:$8 sps:$4 sm:$0xff]   ;;  %v1930_v21 = vld [vmem:[%s2568_s1 + $0x344] ss:$8 sps:$4 sm:$0xff]   ;;  %v1928_v23 = vld [vmem:[%s2568_s1 + $0x340] ss:$8 sps:$4 sm:$0xff]  }
  0x25   : > { %1311 = vmatpush1.bf16.msra.mxu0 %v1846_v31  ;;  %1226 = vmatprep.subr.bf16.mxu1 %v1847_v32  ;;  %v1933_v24 = vld [vmem:[%s2568_s1 + $0x154] ss:$8 sps:$4 sm:$0xff]   ;;  %v1931_v26 = vld [vmem:[%s2568_s1 + $0x150] ss:$8 sps:$4 sm:$0xff]   ;;  %v1939_v28 = vld [vmem:[%s2568_s1 + $0x164] ss:$8 sps:$4 sm:$0xff]  }
  0x26   : > { %1312 = vmatprep.subr.bf16.mxu0 %v1849_v33  ;;  %v1936_v25 = vld [vmem:[%s2568_s1 + $0x354] ss:$8 sps:$4 sm:$0xff]   ;;  %v1934_v27 = vld [vmem:[%s2568_s1 + $0x350] ss:$8 sps:$4 sm:$0xff]   ;;  %v1942_v29 = vld [vmem:[%s2568_s1 + $0x364] ss:$8 sps:$4 sm:$0xff]  }
  0x27   : > { %v1937_v30 = vld [vmem:[%s2568_s1 + $0x160] ss:$8 sps:$4 sm:$0xff]   ;;  %v1945_v32 = vld [vmem:[%s2568_s1 + $0x174] ss:$8 sps:$4 sm:$0xff]  }
  0x28   : > { %1227 = vmatpush1.bf16.msra.mxu1 %v1851_v34  ;;  %v1940_v31 = vld [vmem:[%s2568_s1 + $0x360] ss:$8 sps:$4 sm:$0xff]   ;;  %v1948_v33 = vld [vmem:[%s2568_s1 + $0x374] ss:$8 sps:$4 sm:$0xff]   ;;  %v1999_v34 = vld [vmem:[%s2240_s24 + $0xc] ss:$36 sps:$4 sm:$0xff]  }
  0x29   : > { %1313 = vmatpush1.bf16.msra.mxu0 %v1852_v35  ;;  %1228 = vmatprep.subr.bf16.mxu1 %v1853_v36  ;;  %v2002_v35 = vld [vmem:[%s2240_s24 + $0x1c] ss:$36 sps:$4 sm:$0xff]   ;;  %v1943_v36 = vld [vmem:[%s2568_s1 + $0x170] ss:$8 sps:$4 sm:$0xff]  }
  0x2a   : > { %1314 = vmatprep.subr.bf16.mxu0 %v1855_v37  ;;  %v1946_v37 = vld [vmem:[%s2568_s1 + $0x370] ss:$8 sps:$4 sm:$0xff]   ;;  %v1961_v48 = vld [vmem:[%s2568_s1 + $0x1a0] ss:$8 sps:$4 sm:$0xff]   ;;  %v1972_v51 = vld [vmem:[%s2568_s1 + $0x3b4] ss:$8 sps:$4 sm:$0xff]  }
  0x2c   : > { %1229 = vmatpush1.bf16.msra.mxu1 %v1857_v38  ;;  %v1951_v38 = vld [vmem:[%s2568_s1 + $0x184] ss:$8 sps:$4 sm:$0xff]  }
  0x2d   : > { %1315 = vmatpush1.bf16.msra.mxu0 %v1858_v39  ;;  %1230 = vmatprep.subr.bf16.mxu1 %v1859_v40  ;;  %v1954_v39 = vld [vmem:[%s2568_s1 + $0x384] ss:$8 sps:$4 sm:$0xff]   ;;  %v1949_v40 = vld [vmem:[%s2568_s1 + $0x180] ss:$8 sps:$4 sm:$0xff]  }
  0x2e   : > { %1316 = vmatprep.subr.bf16.mxu0 %v1861_v41  ;;  %v1952_v41 = vld [vmem:[%s2568_s1 + $0x380] ss:$8 sps:$4 sm:$0xff]  }
  0x30   : > { %1231 = vmatpush1.bf16.msra.mxu1 %v1863_v42  ;;  %v1957_v42 = vld [vmem:[%s2568_s1 + $0x194] ss:$8 sps:$4 sm:$0xff]  }
  0x31   : > { %1317 = vmatpush1.bf16.msra.mxu0 %v1864_v43  ;;  %1232 = vmatprep.subr.bf16.mxu1 %v1865_v44  ;;  %v1960_v43 = vld [vmem:[%s2568_s1 + $0x394] ss:$8 sps:$4 sm:$0xff]   ;;  %v1955_v44 = vld [vmem:[%s2568_s1 + $0x190] ss:$8 sps:$4 sm:$0xff]  }
  0x32   : > { %1318 = vmatprep.subr.bf16.mxu0 %v1867_v45  ;;  %v1958_v45 = vld [vmem:[%s2568_s1 + $0x390] ss:$8 sps:$4 sm:$0xff]  }
  0x34   : > { %1233 = vmatpush1.bf16.msra.mxu1 %v1869_v46  ;;  %v1963_v46 = vld [vmem:[%s2568_s1 + $0x1a4] ss:$8 sps:$4 sm:$0xff]  }
  0x35   : > { %1319 = vmatpush1.bf16.msra.mxu0 %v1870_v47  ;;  %1234 = vmatprep.subr.bf16.mxu1 %v1871_v49  ;;  %v1966_v47 = vld [vmem:[%s2568_s1 + $0x3a4] ss:$8 sps:$4 sm:$0xff]   ;;  %v1964_v49 = vld [vmem:[%s2568_s1 + $0x3a0] ss:$8 sps:$4 sm:$0xff]  }
  0x36   : > { %1320 = vmatprep.subr.bf16.mxu0 %v1873_v50  ;;  %v1969_v50 = vld [vmem:[%s2568_s1 + $0x1b4] ss:$8 sps:$4 sm:$0xff]  }
  0x38   : > { %1235 = vmatpush1.bf16.msra.mxu1 %v1875_v52  ;;  %v1967_v52 = vld [vmem:[%s2568_s1 + $0x1b0] ss:$8 sps:$4 sm:$0xff]  }
  0x39   : > { %1321 = vmatpush1.bf16.msra.mxu0 %v1876_v53  ;;  %1236 = vmatprep.subr.bf16.mxu1 %v1877_v54  ;;  %v1970_v53 = vld [vmem:[%s2568_s1 + $0x3b0] ss:$8 sps:$4 sm:$0xff]   ;;  %v1975_v54 = vld [vmem:[%s2568_s1 + $0x1c4] ss:$8 sps:$4 sm:$0xff]  }
  0x3a   : > { %1322 = vmatprep.subr.bf16.mxu0 %v1879_v55  ;;  %v1978_v55 = vld [vmem:[%s2568_s1 + $0x3c4] ss:$8 sps:$4 sm:$0xff]  }
  0x3c   : > { %1237 = vmatpush1.bf16.msra.mxu1 %v1881_v56  ;;  %v1973_v56 = vld [vmem:[%s2568_s1 + $0x1c0] ss:$8 sps:$4 sm:$0xff]  }
  0x3d   : > { %1323 = vmatpush1.bf16.msra.mxu0 %v1882_v57  ;;  %1238 = vmatprep.subr.bf16.mxu1 %v1883_v58  ;;  %v1976_v57 = vld [vmem:[%s2568_s1 + $0x3c0] ss:$8 sps:$4 sm:$0xff]   ;;  %v1981_v58 = vld [vmem:[%s2568_s1 + $0x1d4] ss:$8 sps:$4 sm:$0xff]  }
  0x3e   : > { %1324 = vmatprep.subr.bf16.mxu0 %v1885_v59  ;;  %v1984_v59 = vld [vmem:[%s2568_s1 + $0x3d4] ss:$8 sps:$4 sm:$0xff]  }
  0x40   : > { %1239 = vmatpush1.bf16.msra.mxu1 %v1887_v60  ;;  %v1979_v60 = vld [vmem:[%s2568_s1 + $0x1d0] ss:$8 sps:$4 sm:$0xff]  }
  0x41   : > { %1325 = vmatpush1.bf16.msra.mxu0 %v1888_v61  ;;  %1240 = vmatprep.subr.bf16.mxu1 %v1889_v62  ;;  %v1982_v61 = vld [vmem:[%s2568_s1 + $0x3d0] ss:$8 sps:$4 sm:$0xff]   ;;  %v1987_v62 = vld [vmem:[%s2568_s1 + $0x1e4] ss:$8 sps:$4 sm:$0xff]  }
  0x42   : > { %1326 = vmatprep.subr.bf16.mxu0 %v1891_v63  ;;  %v1990_v63 = vld [vmem:[%s2568_s1 + $0x3e4] ss:$8 sps:$4 sm:$0xff]  }
  0x44   : > { %1241 = vmatpush1.bf16.msra.mxu1 %v1893_v0  ;;  %v1985_v0 = vld [vmem:[%s2568_s1 + $0x1e0] ss:$8 sps:$4 sm:$0xff]  }
  0x45   : > { %1327 = vmatpush1.bf16.msra.mxu0 %v1894_v1  ;;  %1253 = vmatprep.subr.bf16.mxu1 %v1900_v2  ;;  %v1988_v1 = vld [vmem:[%s2568_s1 + $0x3e0] ss:$8 sps:$4 sm:$0xff]   ;;  %v1993_v2 = vld [vmem:[%s2568_s1 + $0x1f4] ss:$8 sps:$4 sm:$0xff]  }
  0x46   : > { %1339 = vmatprep.subr.bf16.mxu0 %v1906_v3  ;;  %v1996_v3 = vld [vmem:[%s2568_s1 + $0x3f4] ss:$8 sps:$4 sm:$0xff]  }
  0x47   : > { %1243 = vmatmul.mubr.bf16.vlgmr.msra.gmra.mrb[0].mxu1 %v1895_v4  ;;  %v1991_v4 = vld [vmem:[%s2568_s1 + $0x1f0] ss:$8 sps:$4 sm:$0xff]  }
  0x48   : > { %1329 = vmatmul.mubr.bf16.vlgmr.msra.gmra.mrb[0].mxu0 %v1901_v6  ;;  %1254 = vmatpush1.bf16.msra.mxu1 %v1898_v5  ;;  %v1994_v5 = vld [vmem:[%s2568_s1 + $0x3f0] ss:$8 sps:$4 sm:$0xff]   ;;  %v2005_v6 = vld [vmem:[%s2568_s1 + $0x404] ss:$8 sps:$4 sm:$0xff]  }
  0x49   : > { %1340 = vmatpush1.bf16.msra.mxu0 %v1904_v7  ;;  %1255 = vmatprep.subr.bf16.mxu1 %v1909_v8  ;;  %v1997_v7 = vld [vmem:[%s2240_s24 + $0x8] ss:$36 sps:$4 sm:$0xff]   ;;  %v2000_v8 = vld [vmem:[%s2240_s24 + $0x18] ss:$36 sps:$4 sm:$0xff]  }
  0x4a   : > { %1341 = vmatprep.subr.bf16.mxu0 %v1912_v9  ;;  %1285 = vmatprep.mubr.bf16.mxu1 %v1999_v34  ;;  %v2003_v9 = vld [vmem:[%s2568_s1 + $0x400] ss:$8 sps:$4 sm:$0xff]  }
  0x4b   : > { %1371 = vmatprep.mubr.bf16.mxu0 %v2002_v35  ;;  %v1441_v35 = vld [vmem:[%s2570_s3] sm:$0x3] }
  0x4c   : > { %1256 = vmatpush1.bf16.msra.mxu1 %v1907_v10  ;;  %v2008_v10 = vld [vmem:[%s2568_s1 + $0x414] ss:$8 sps:$4 sm:$0xff]  }
  0x4d   : > { %1342 = vmatpush1.bf16.msra.mxu0 %v1910_v11  ;;  %1257 = vmatprep.subr.bf16.mxu1 %v1915_v12  ;;  %v2006_v11 = vld [vmem:[%s2568_s1 + $0x410] ss:$8 sps:$4 sm:$0xff]   ;;  %v2052_v12 = vmov 0  }
  0x4e   : > { %1343 = vmatprep.subr.bf16.mxu0 %v1918_v13  ;;  %v2011_v13 = vld [vmem:[%s2568_s1 + $0x424] ss:$8 sps:$4 sm:$0xff]  }
  0x50   : > { %1258 = vmatpush1.bf16.msra.mxu1 %v1913_v14  ;;  %v2009_v14 = vld [vmem:[%s2568_s1 + $0x420] ss:$8 sps:$4 sm:$0xff]  }
  0x51   : > { %1344 = vmatpush1.bf16.msra.mxu0 %v1916_v15  ;;  %1259 = vmatprep.subr.bf16.mxu1 %v1921_v16  ;;  %v2014_v15 = vld [vmem:[%s2568_s1 + $0x434] ss:$8 sps:$4 sm:$0xff]   ;;  %v2012_v16 = vld [vmem:[%s2568_s1 + $0x430] ss:$8 sps:$4 sm:$0xff]  }
  0x52   : > { %1345 = vmatprep.subr.bf16.mxu0 %v1924_v17  ;;  %v2017_v17 = vld [vmem:[%s2568_s1 + $0x444] ss:$8 sps:$4 sm:$0xff]  }
  0x54   : > { %1260 = vmatpush1.bf16.msra.mxu1 %v1919_v18  ;;  %v2015_v18 = vld [vmem:[%s2568_s1 + $0x440] ss:$8 sps:$4 sm:$0xff]  }
  0x55   : > { %1346 = vmatpush1.bf16.msra.mxu0 %v1922_v19  ;;  %1261 = vmatprep.subr.bf16.mxu1 %v1927_v20  ;;  %v2020_v19 = vld [vmem:[%s2568_s1 + $0x454] ss:$8 sps:$4 sm:$0xff]   ;;  %v2018_v20 = vld [vmem:[%s2568_s1 + $0x450] ss:$8 sps:$4 sm:$0xff]  }
  0x56   : > { %1347 = vmatprep.subr.bf16.mxu0 %v1930_v21  ;;  %v2023_v21 = vld [vmem:[%s2568_s1 + $0x464] ss:$8 sps:$4 sm:$0xff]  }
  0x58   : > { %1262 = vmatpush1.bf16.msra.mxu1 %v1925_v22  ;;  %v2021_v22 = vld [vmem:[%s2568_s1 + $0x460] ss:$8 sps:$4 sm:$0xff]  }
  0x59   : > { %1348 = vmatpush1.bf16.msra.mxu0 %v1928_v23  ;;  %1263 = vmatprep.subr.bf16.mxu1 %v1933_v24  ;;  %v2026_v23 = vld [vmem:[%s2568_s1 + $0x474] ss:$8 sps:$4 sm:$0xff]   ;;  %v2024_v24 = vld [vmem:[%s2568_s1 + $0x470] ss:$8 sps:$4 sm:$0xff]  }
  0x5a   : > { %1349 = vmatprep.subr.bf16.mxu0 %v1936_v25  ;;  %v2027_v25 = vld [vmem:[%s2240_s24 + $0x20] ss:$36 sps:$4 sm:$0xff]   ;;  %s1756_s24 = sshll.u32 %s2577_s9, 4 }
  0x5b   : > { %s286_s19 = scalar_lea.vmem %s2571_s4, %s1756_s24 }
  0x5c   : > { %1264 = vmatpush1.bf16.msra.mxu1 %v1931_v26 }
  0x5d   : > { %1350 = vmatpush1.bf16.msra.mxu0 %v1934_v27  ;;  %1265 = vmatprep.subr.bf16.mxu1 %v1939_v28 }
  0x5e   : > { %1351 = vmatprep.subr.bf16.mxu0 %v1942_v29 }
  0x60   : > { %1266 = vmatpush1.bf16.msra.mxu1 %v1937_v30  ;;  %v1427_v30 = vlaneseq }
  0x61   : > { %1352 = vmatpush1.bf16.msra.mxu0 %v1940_v31  ;;  %1267 = vmatprep.subr.bf16.mxu1 %v1945_v32 }
  0x62   : > { %1353 = vmatprep.subr.bf16.mxu0 %v1948_v33  ;;  %v1428_v31 = vshrl.u32 %v1427_v30, 7  ;;  %v1425_v33 = vld [vmem:[%s2569_s2] sm:$0x3] }
  0x64   : > { %1268 = vmatpush1.bf16.msra.mxu1 %v1943_v36  ;;  %v1429_v32 = vsub.s32 0, %v1428_v31  ;;  %v1433_v34 = vsub.s32 1, %v1428_v31 }
  0x65   : > { %1354 = vmatpush1.bf16.msra.mxu0 %v1946_v37  ;;  %1269 = vmatprep.subr.bf16.mxu1 %v1951_v38 }
  0x66   : > { %1355 = vmatprep.subr.bf16.mxu0 %v1954_v39  ;;  %v1430_v36 = vrot.slane %v1425_v33, %v1429_v32  ;;  %v1434_v38 = vrot.slane %v1425_v33, %v1433_v34 }
  0x68   : > { %1270 = vmatpush1.bf16.msra.mxu1 %v1949_v40  ;;  %v1446_v40 = vrot.slane %v1441_v35, %v1429_v32 }
  0x69   : > { %1356 = vmatpush1.bf16.msra.mxu0 %v1952_v41  ;;  %1271 = vmatprep.subr.bf16.mxu1 %v1957_v42 }
  0x6a   : > { %1357 = vmatprep.subr.bf16.mxu0 %v1960_v43  ;;  %v1450_v43 = vrot.slane %v1441_v35, %v1433_v34 }
  0x6c   : > { %1272 = vmatpush1.bf16.msra.mxu1 %v1955_v44 }
  0x6d   : > { %1358 = vmatpush1.bf16.msra.mxu0 %v1958_v45  ;;  %1273 = vmatprep.subr.bf16.mxu1 %v1963_v46 }
  0x6e   : > { %1359 = vmatprep.subr.bf16.mxu0 %v1966_v47 }
  0x70   : > { %1274 = vmatpush1.bf16.msra.mxu1 %v1961_v48 }
  0x71   : > { %1360 = vmatpush1.bf16.msra.mxu0 %v1964_v49  ;;  %1275 = vmatprep.subr.bf16.mxu1 %v1969_v50 }
  0x72   : > { %1361 = vmatprep.subr.bf16.mxu0 %v1972_v51 }
  0x74   : > { %1276 = vmatpush1.bf16.msra.mxu1 %v1967_v52 }
  0x75   : > { %1362 = vmatpush1.bf16.msra.mxu0 %v1970_v53  ;;  %1277 = vmatprep.subr.bf16.mxu1 %v1975_v54 }
  0x76   : > { %1363 = vmatprep.subr.bf16.mxu0 %v1978_v55 }
  0x78   : > { %1278 = vmatpush1.bf16.msra.mxu1 %v1973_v56 }
  0x79   : > { %1364 = vmatpush1.bf16.msra.mxu0 %v1976_v57  ;;  %1279 = vmatprep.subr.bf16.mxu1 %v1981_v58 }
  0x7a   : > { %1365 = vmatprep.subr.bf16.mxu0 %v1984_v59 }
  0x7c   : > { %1280 = vmatpush1.bf16.msra.mxu1 %v1979_v60 }
  0x7d   : > { %1366 = vmatpush1.bf16.msra.mxu0 %v1982_v61  ;;  %1281 = vmatprep.subr.bf16.mxu1 %v1987_v62 }
  0x7e   : > { %1367 = vmatprep.subr.bf16.mxu0 %v1990_v63 }
  0x80   : > { %1282 = vmatpush1.bf16.msra.mxu1 %v1985_v0 }
  0x81   : > { %1368 = vmatpush1.bf16.msra.mxu0 %v1988_v1  ;;  %1283 = vmatprep.subr.bf16.mxu1 %v1993_v2 }
  0x82   : > { %1369 = vmatprep.subr.bf16.mxu0 %v1996_v3 }
  0x84   : > { %1284 = vmatpush1.bf16.msra.mxu1 %v1991_v4 }
  0x85   : > { %1370 = vmatpush1.bf16.msra.mxu0 %v1994_v5 }
  0x86   : > { %1382 = vmatprep.subr.bf16.mxu0 %v2005_v6 }
  0x87   : > { %1286 = vmatmul.mubr.bf16.vlgmr.msra.gmra.mrb[0].mxu1 %v1997_v7 }
  0x88   : > { %1372 = vmatmul.mubr.bf16.vlgmr.msra.gmra.mrb[0].mxu0 %v2000_v8 }
  0x89   : > { %1383 = vmatpush1.bf16.msra.mxu0 %v2003_v9  ;;  %1414 = vmatprep.mubr.bf16.mxu0 %v2052_v12 }
  0x8a   : > { %1384 = vmatprep.subr.bf16.mxu0 %v2008_v10 }
  0x8d   : > { %1385 = vmatpush1.bf16.msra.mxu0 %v2006_v11 }
  0x8e   : > { %1386 = vmatprep.subr.bf16.mxu0 %v2011_v13 }
  0x91   : > { %1387 = vmatpush1.bf16.msra.mxu0 %v2009_v14 }
  0x92   : > { %1388 = vmatprep.subr.bf16.mxu0 %v2014_v15 }
  0x95   : > { %1389 = vmatpush1.bf16.msra.mxu0 %v2012_v16 }
  0x96   : > { %1390 = vmatprep.subr.bf16.mxu0 %v2017_v17 }
  0x99   : > { %1391 = vmatpush1.bf16.msra.mxu0 %v2015_v18 }
  0x9a   : > { %1392 = vmatprep.subr.bf16.mxu0 %v2020_v19 }
  0x9d   : > { %1393 = vmatpush1.bf16.msra.mxu0 %v2018_v20 }
  0x9e   : > { %1394 = vmatprep.subr.bf16.mxu0 %v2023_v21 }
  0xa1   : > { %1395 = vmatpush1.bf16.msra.mxu0 %v2021_v22 }
  0xa2   : > { %1396 = vmatprep.subr.bf16.mxu0 %v2026_v23 }
  0xa5   : > { %1397 = vmatpush1.bf16.msra.mxu0 %v2024_v24 }
  0xa8   : > { %1415 = vmatmul.mubr.bf16.vlgmr.msra.gmra.mrb[0].mxu0 %v2027_v25 }
 0x15a   : > { %v1287_v26 = vpop.f32.mrb[0].mxu1 }
 0x15b   : > { %v1289_v27 = vpop.f32.mrb[1].mxu1 }
 0x15c   : > { %v1291_v28 = vpop.f32.mrb[2].mxu1 }
 0x15d   : > { %v1293_v29 = vpop.f32.mrb[3].mxu1 }
 0x17b   : > { %v1416_v37 = vpop.f32.mrb[0].mxu0 }
 0x17c   : > { %v1757_v39 = vadd.f32 %v1416_v37, %v1287_v26  ;;  %v1418_v41 = vpop.f32.mrb[1].mxu0 }
 0x17d   : > { %v1758_v42 = vadd.f32 %v1418_v41, %v1289_v27  ;;  %v1420_v44 = vpop.f32.mrb[2].mxu0 }
 0x17e   : > { %v1437_v45 = vmul.f32 %v1757_v39, %v1430_v36  ;;  %v1759_v46 = vadd.f32 %v1420_v44, %v1291_v28  ;;  %v1422_v47 = vpop.f32.mrb[3].mxu0 }
 0x17f   : > { %v1438_v48 = vmul.f32 %v1758_v42, %v1434_v38  ;;  %v1760_v49 = vadd.f32 %v1422_v47, %v1293_v29 }
 0x180   : > { %v1453_v50 = vadd.f32 %v1446_v40, %v1437_v45  ;;  %v1439_v51 = vmul.f32 %v1759_v46, %v1430_v36 }
 0x181   : > { %v1454_v52 = vadd.f32 %v1450_v43, %v1438_v48  ;;  %v1440_v53 = vmul.f32 %v1760_v49, %v1434_v38 }
 0x182   : > { %v1457_v54 = vmax.f32 %v1453_v50, 0.0  ;;  %v1455_v55 = vadd.f32 %v1446_v40, %v1439_v51 }
 0x183   : > { %v1458_v56 = vmax.f32 %v1454_v52, 0.0  ;;  %v1456_v57 = vadd.f32 %v1450_v43, %v1440_v53 }
 0x184   : > { %1461 = vst [vmem:[%s286_s19] sm:$0xff] %v1457_v54  ;;  %v1459_v58 = vmax.f32 %v1455_v55, 0.0 }
 0x185   : > { %1462 = vst [vmem:[%s286_s19 + $0x8] sm:$0xff] %v1458_v56  ;;  %v1460_v59 = vmax.f32 %v1456_v57, 0.0 }
 0x186   : > { %1463 = vst [vmem:[%s286_s19 + $0x10] sm:$0xff] %v1459_v58 }
 0x187   : > { %1464 = vst [vmem:[%s286_s19 + $0x18] sm:$0xff] %v1460_v59 }
 0x188 PF: > { %s14_s17 = sadd.s32 1, %s2050_s17   ;;  %s2572_s15 = smov %s2046_s16 }
 0x189   : > { %p11_p5 = scmp.ge.s32.totalorder %s14_s17, 4   ;;  %s2573_s16 = smov %s2575_s18 }
 0x18b   :  { %13 = sbr.rel (!%p11_p5) target bundleno = 2 (0x2), region = 75 }

</bundles_post_ra>
